<compile_context>
chip_gen: v5e
topology: v5e:2x2
jax: 0.10.0
libtpu: 0.0.40
codegen_flags: <defaults>
</compile_context>

<pallas_src>
import functools

import numpy as np
import jax
import jax.numpy as jnp
from jax.experimental import pallas as pl
from jax.experimental.pallas import tpu as pltpu


_PALLAS_MIN_FULL = 256    # use the Pallas kernel while min(Hf, Wf) >= this


# ----------------------------------------------------------------------------
# Host-side construction of exact PyTorch bilinear resampling matrices.
# ----------------------------------------------------------------------------
def avgpool2_matrix(n_in: int) -> np.ndarray:
    """F.interpolate(scale_factor=0.5, mode='bilinear', align_corners=False)
    on an even-sized axis is exactly 2x average pooling."""
    n_out = n_in // 2
    m = np.zeros((n_out, n_in), np.float32)
    for i in range(n_out):
        m[i, 2 * i] = 0.5
        m[i, 2 * i + 1] = 0.5
    return m


def bilinear_up_matrix(n_out: int, n_in: int) -> np.ndarray:
    """PyTorch bilinear upsample to explicit size, align_corners=False."""
    m = np.zeros((n_out, n_in), np.float32)
    scale = n_in / n_out
    for i in range(n_out):
        src = scale * (i + 0.5) - 0.5
        if src < 0.0:
            src = 0.0
        i0 = min(int(np.floor(src)), n_in - 1)
        i1 = min(i0 + 1, n_in - 1)
        w1 = src - i0
        m[i, i0] += 1.0 - w1
        m[i, i1] += w1
    return m


@functools.lru_cache(maxsize=None)
def _level_matrices(hf: int, wf: int):
    """(Ad, Au, BdT, BuT) for one pyramid level with full size (hf, wf)."""
    hl, wl = hf // 2, wf // 2
    ad = avgpool2_matrix(hf)                                   # (hl, hf)  XLA path only
    bdt = np.ascontiguousarray(avgpool2_matrix(wf).T)          # (wf, wl)
    au = bilinear_up_matrix(hf, hl)                            # (hf, hl)
    but = np.ascontiguousarray(bilinear_up_matrix(wf, wl).T)   # (wl, wf)
    return ad, au, bdt, but


# ----------------------------------------------------------------------------
# Generation-aware VMEM budgets.
# ----------------------------------------------------------------------------
@functools.lru_cache(maxsize=None)
def _vmem_budgets():
    """(vmem_limit_bytes, per-grid-step block budget bytes)."""
    try:
        cap = int(pltpu.get_tpu_info().vmem_capacity_bytes)
    except Exception:
        cap = 64 << 20                       # be conservative if query fails
    if cap >= (100 << 20):                   # v5e / v6e: 128 MiB physical VMEM
        return 64 << 20, 8 << 20
    return 40 << 20, 4 << 20                 # v7x: 64 MiB physical VMEM


# ----------------------------------------------------------------------------
# Fused per-level Pallas kernel: one grid step processes G images and emits
# both the downsampled level and the Laplacian residual (no HBM round-trip).
# ----------------------------------------------------------------------------
def _fused_level_kernel(au_ref, bdt_ref, but_ref, x_ref, down_ref, lap_ref,
                        t1_ref, u_ref, *, h_first):
    g, hf, wf = x_ref.shape
    hl, wl = hf // 2, wf // 2

    # ---- downsample ---------------------------------------------------------
    # Lane-side (W) avgpool for all G images in ONE large-M MXU matmul:
    # (G*Hf, Wf) @ (Wf, Wl).  Hf % 16 == 0, so merging leading dims is clean.
    t1_ref[...] = jnp.dot(x_ref[...].reshape(g * hf, wf), bdt_ref[...],
                          preferred_element_type=jnp.float32)          # (G*Hf, Wl)
    # Sublane-side (H) avgpool on the VPU via stride-2 sublane loads.  Since
    # Hf is even, per-image row pairs stay aligned under the slab-level stride.
    down = 0.5 * (t1_ref[pl.ds(0, g * hl, stride=2), :]
                  + t1_ref[pl.ds(1, g * hl, stride=2), :])              # (G*Hl, Wl)
    down_ref[...] = down.reshape(g, hl, wl)

    # ---- Laplacian: x - bilinear_up(down) -----------------------------------
    if h_first:
        # Per-image Au @ down (M = Hf) into a (G*Hf, Wl) scratch, then ONE
        # large-M matmul against Bu^T and a single big slab subtract.
        for gi in range(g):                                             # static
            u_ref[gi * hf:(gi + 1) * hf, :] = jnp.dot(
                au_ref[...], down_ref[gi], preferred_element_type=jnp.float32)
        up = jnp.dot(u_ref[...], but_ref[...],
                     preferred_element_type=jnp.float32)                # (G*Hf, Wf)
        lap_ref[...] = x_ref[...] - up.reshape(g, hf, wf)
    else:
        # Cheaper association for some aspect ratios: one big (G*Hl, Wl) @ Bu^T
        # first, then per-image Au @ (.).
        u_ref[...] = jnp.dot(down_ref[...].reshape(g * hl, wl), but_ref[...],
                             preferred_element_type=jnp.float32)        # (G*Hl, Wf)
        for gi in range(g):
            lap_ref[gi] = x_ref[gi] - jnp.dot(
                au_ref[...], u_ref[gi * hl:(gi + 1) * hl, :],
                preferred_element_type=jnp.float32)


def _pick_group(n: int, hf: int, wf: int, budget: int) -> int:
    """Largest divisor of n whose per-step VMEM footprint fits `budget` while
    keeping >= 4 grid steps (so both v7x TensorCores have >= 2 steps each and
    the pipeline can overlap DMA with compute); prefer an even step count."""
    # Double-buffered x/lap/down blocks + single-buffered scratch, f32.
    per_img = ((2 * hf * wf + (hf // 2) * (wf // 2)) * 2 + hf * wf) * 4
    min_steps = min(4, n)
    feasible = [g for g in range(1, n + 1)
                if n % g == 0 and g * per_img <= budget and n // g >= min_steps]
    if not feasible:
        return 1
    even = [g for g in feasible if (n // g) % 2 == 0]
    return max(even) if even else max(feasible)


def _pallas_level(x, au, bdt, but, group, h_first, vmem_limit):
    n, hf, wf = x.shape
    hl, wl = hf // 2, wf // 2
    u_shape = (group * hf, wl) if h_first else (group * hl, wf)
    kernel = functools.partial(_fused_level_kernel, h_first=h_first)
    return pl.pallas_call(
        kernel,
        out_shape=(
            jax.ShapeDtypeStruct((n, hl, wl), jnp.float32),    # down
            jax.ShapeDtypeStruct((n, hf, wf), jnp.float32),    # lap
        ),
        grid=(n // group,),
        in_specs=[
            pl.BlockSpec((hf, hl), lambda i: (0, 0)),          # Au
            pl.BlockSpec((wf, wl), lambda i: (0, 0)),          # Bd^T
            pl.BlockSpec((wl, wf), lambda i: (0, 0)),          # Bu^T
            pl.BlockSpec((group, hf, wf), lambda i: (i, 0, 0)),
        ],
        out_specs=(
            pl.BlockSpec((group, hl, wl), lambda i: (i, 0, 0)),
            pl.BlockSpec((group, hf, wf), lambda i: (i, 0, 0)),
        ),
        scratch_shapes=[
            pltpu.VMEM((group * hf, wl), jnp.float32),         # t1 (W-pooled slab)
            pltpu.VMEM(u_shape, jnp.float32),                  # up-path intermediate
        ],
        compiler_params=pltpu.CompilerParams(
            dimension_semantics=("parallel",),
            vmem_limit_bytes=vmem_limit,
        ),
    )(au, bdt, but, x)


def _xla_level(x, ad, au, bdt, but):
    """Small tail levels: plain XLA einsums (full f32 precision, one fused jit)."""
    hp = jax.lax.Precision.HIGHEST
    t = jnp.einsum("oh,nhw->now", ad, x, precision=hp)
    down = jnp.einsum("now,wp->nop", t, bdt, precision=hp)
    t = jnp.einsum("oh,nhw->now", au, down, precision=hp)
    up = jnp.einsum("now,wp->nop", t, but, precision=hp)
    return down, x - up


def _level(x, hf, wf):
    ad, au, bdt, but = (jnp.asarray(m) for m in _level_matrices(hf, wf))
    hl, wl = hf // 2, wf // 2
    if min(hf, wf) >= _PALLAS_MIN_FULL and hf % 16 == 0 and wf % 2 == 0:
        vmem_limit, block_budget = _vmem_budgets()
        group = _pick_group(x.shape[0], hf, wf, block_budget)
        # Cheaper association for the up path ((Au@down)@BuT vs Au@(down@BuT)).
        h_first = (hf * hl * wl + hf * wl * wf) <= (hl * wl * wf + hf * hl * wf)
        return _pallas_level(x, au, bdt, but, group, h_first, vmem_limit)
    return _xla_level(x, ad, au, bdt, but)


# ----------------------------------------------------------------------------
# LapFusion.depth_extractor pyramid (rgb_list).
# ----------------------------------------------------------------------------
@jax.jit
def lapfusion_rgb_pyramid(x):
    """x: (B, C, H, W) float32, H and W divisible by 32.

    Returns rgb_list = [rgb_down32, lap5, lap4, lap3, lap2, lap1] exactly as
    LapFusion.depth_extractor builds it."""
    b, c, h, w = x.shape
    cur = x.reshape(b * c, h, w).astype(jnp.float32)
    cur_h, cur_w = h, w
    laps = []                                   # lap1 .. lap5
    for _ in range(5):
        down, lap = _level(cur, cur_h, cur_w)
        laps.append(lap)
        cur = down
        cur_h //= 2
        cur_w //= 2

    def unflat(t):
        return t.reshape(b, c, t.shape[1], t.shape[2])

    return [unflat(cur)] + [unflat(l) for l in laps[::-1]]


# ----------------------------------------------------------------------------
# Pure-numpy reference (same matrices) for a correctness check.
# ----------------------------------------------------------------------------
def _ref_pyramid(x):
    b, c, h, w = x.shape
    flat = np.asarray(x, np.float32).reshape(b * c, h, w)
    downs = [flat]
    ch, cw = h, w
    for _ in range(5):
        a = avgpool2_matrix(ch)
        bm = avgpool2_matrix(cw)
        downs.append(np.einsum("oi,nij,pj->nop", a, downs[-1], bm))
        ch //= 2
        cw //= 2
    laps = []
    for k in range(5, 0, -1):
        full_img, low_img = downs[k - 1], downs[k]
        a = bilinear_up_matrix(full_img.shape[1], low_img.shape[1])
        bm = bilinear_up_matrix(full_img.shape[2], low_img.shape[2])
        laps.append(full_img - np.einsum("oi,nij,pj->nop", a, low_img, bm))

    def unflat(t):
        return t.reshape(b, c, t.shape[1], t.shape[2])

    return [unflat(downs[5])] + [unflat(l) for l in laps]


if __name__ == "__main__":
    key = jax.random.PRNGKey(0)
    # RGB input; small but large enough that the fused Pallas kernel runs on
    # the top pyramid level (256); the lane-sparse tail goes through XLA.
    B, C, H, W = 2, 3, 256, 256
    x = jax.random.normal(key, (B, C, H, W), dtype=jnp.float32)

    rgb_list = jax.block_until_ready(lapfusion_rgb_pyramid(x))

    ref_list = _ref_pyramid(np.asarray(x))
    for got, ref in zip(rgb_list, ref_list):
        np.testing.assert_allclose(np.asarray(got), ref, rtol=1e-5, atol=1e-5)

    print("KERNEL_OK")
</pallas_src>

<mosaic_0001>
module attributes {stable_mosaic.version = 11 : i64} {
  func.func @_fused_level_kernel(%arg0: i32, %arg1: memref<256x128xf32, #tpu.memory_space<vmem>>, %arg2: memref<256x128xf32, #tpu.memory_space<vmem>>, %arg3: memref<128x256xf32, #tpu.memory_space<vmem>>, %arg4: memref<1x256x256xf32, #tpu.memory_space<vmem>>, %arg5: memref<1x128x128xf32, #tpu.memory_space<vmem>>, %arg6: memref<1x256x256xf32, #tpu.memory_space<vmem>>, %arg7: memref<256x128xf32, #tpu.memory_space<vmem>>, %arg8: memref<256x128xf32, #tpu.memory_space<vmem>>) attributes {dimension_semantics = [#tpu.dimension_semantics<parallel>], iteration_bounds = array<i64: 6>, scalar_prefetch = 0 : i64, scratch_operands = 2 : i64, tpu.core_type = #tpu.core_type<tc>, window_params = [{pipeline_mode = #tpu.pipeline_mode<synchronous>, transform_indices = @transform_0, window_bounds = array<i64: 256, 128>}, {pipeline_mode = #tpu.pipeline_mode<synchronous>, transform_indices = @transform_1, window_bounds = array<i64: 256, 128>}, {pipeline_mode = #tpu.pipeline_mode<synchronous>, transform_indices = @transform_2, window_bounds = array<i64: 128, 256>}, {transform_indices = @transform_3, window_bounds = array<i64: 1, 256, 256>}, {transform_indices = @transform_4, window_bounds = array<i64: 1, 128, 128>}, {transform_indices = @transform_5, window_bounds = array<i64: 1, 256, 256>}]} {
    %c0 = arith.constant 0 : index
    %c0_0 = arith.constant 0 : index
    %c0_1 = arith.constant 0 : index
    %0 = vector.load %arg4[%c0, %c0_0, %c0_1] : memref<1x256x256xf32, #tpu.memory_space<vmem>>, vector<1x256x256xf32>
    %1 = vector.shape_cast %0 : vector<1x256x256xf32> to vector<256x256xf32>
    %c0_2 = arith.constant 0 : index
    %c0_3 = arith.constant 0 : index
    %2 = vector.load %arg2[%c0_2, %c0_3] : memref<256x128xf32, #tpu.memory_space<vmem>>, vector<256x128xf32>
    %cst = arith.constant dense<0.000000e+00> : vector<256x128xf32>
    %3 = tpu.matmul %1, %2, %cst {dimension_numbers = #tpu.dot_dimension_numbers<[1], [0], [0], [1], [0, 0, 1, 1], [], []>} : vector<256x256xf32>, vector<256x128xf32>, vector<256x128xf32> -> vector<256x128xf32>
    %c0_4 = arith.constant 0 : index
    %c0_5 = arith.constant 0 : index
    %4 = vector.load %arg7[%c0_4, %c0_5] : memref<256x128xf32, #tpu.memory_space<vmem>>, vector<256x128xf32>
    tpu.vector_store %arg7[%c0_4, %c0_5], %3 {strides = array<i32>} : memref<256x128xf32, #tpu.memory_space<vmem>>, vector<256x128xf32>,
    %c0_6 = arith.constant 0 : index
    %c0_7 = arith.constant 0 : index
    %5 = tpu.strided_load %arg7[%c0_6, %c0_7] {strides = array<i32: 2, 1>} : memref<256x128xf32, #tpu.memory_space<vmem>>, vector<128x128xf32>
    %c1 = arith.constant 1 : index
    %c0_8 = arith.constant 0 : index
    %6 = tpu.strided_load %arg7[%c1, %c0_8] {strides = array<i32: 2, 1>} : memref<256x128xf32, #tpu.memory_space<vmem>>, vector<128x128xf32>
    %7 = arith.addf %5, %6 : vector<128x128xf32>
    %cst_9 = arith.constant 5.000000e-01 : f32
    %8 = vector.broadcast %cst_9 : f32 to vector<128x128xf32>
    %9 = arith.mulf %8, %7 : vector<128x128xf32>
    %10 = vector.shape_cast %9 : vector<128x128xf32> to vector<1x128x128xf32>
    %c0_10 = arith.constant 0 : index
    %c0_11 = arith.constant 0 : index
    %c0_12 = arith.constant 0 : index
    %11 = vector.load %arg5[%c0_10, %c0_11, %c0_12] : memref<1x128x128xf32, #tpu.memory_space<vmem>>, vector<1x128x128xf32>
    tpu.vector_store %arg5[%c0_10, %c0_11, %c0_12], %10 {strides = array<i32>} : memref<1x128x128xf32, #tpu.memory_space<vmem>>, vector<1x128x128xf32>,
    %c0_13 = arith.constant 0 : index
    %c0_14 = arith.constant 0 : index
    %12 = vector.load %arg1[%c0_13, %c0_14] : memref<256x128xf32, #tpu.memory_space<vmem>>, vector<256x128xf32>
    %c0_15 = arith.constant 0 : index
    %c0_16 = arith.constant 0 : index
    %c0_17 = arith.constant 0 : index
    %13 = vector.load %arg5[%c0_15, %c0_16, %c0_17] : memref<1x128x128xf32, #tpu.memory_space<vmem>>, vector<1x128x128xf32>
    %14 = vector.shape_cast %13 : vector<1x128x128xf32> to vector<128x128xf32>
    %cst_18 = arith.constant dense<0.000000e+00> : vector<256x128xf32>
    %15 = tpu.matmul %12, %14, %cst_18 {dimension_numbers = #tpu.dot_dimension_numbers<[1], [0], [0], [1], [0, 0, 1, 1], [], []>} : vector<256x128xf32>, vector<128x128xf32>, vector<256x128xf32> -> vector<256x128xf32>
    %c0_19 = arith.constant 0 : index
    %c0_20 = arith.constant 0 : index
    %16 = vector.load %arg8[%c0_19, %c0_20] : memref<256x128xf32, #tpu.memory_space<vmem>>, vector<256x128xf32>
    tpu.vector_store %arg8[%c0_19, %c0_20], %15 {strides = array<i32>} : memref<256x128xf32, #tpu.memory_space<vmem>>, vector<256x128xf32>,
    %c0_21 = arith.constant 0 : index
    %c0_22 = arith.constant 0 : index
    %17 = vector.load %arg8[%c0_21, %c0_22] : memref<256x128xf32, #tpu.memory_space<vmem>>, vector<256x128xf32>
    %c0_23 = arith.constant 0 : index
    %c0_24 = arith.constant 0 : index
    %18 = vector.load %arg3[%c0_23, %c0_24] : memref<128x256xf32, #tpu.memory_space<vmem>>, vector<128x256xf32>
    %cst_25 = arith.constant dense<0.000000e+00> : vector<256x256xf32>
    %19 = tpu.matmul %17, %18, %cst_25 {dimension_numbers = #tpu.dot_dimension_numbers<[1], [0], [0], [1], [0, 0, 1, 1], [], []>} : vector<256x128xf32>, vector<128x256xf32>, vector<256x256xf32> -> vector<256x256xf32>
    %c0_26 = arith.constant 0 : index
    %c0_27 = arith.constant 0 : index
    %c0_28 = arith.constant 0 : index
    %20 = vector.load %arg4[%c0_26, %c0_27, %c0_28] : memref<1x256x256xf32, #tpu.memory_space<vmem>>, vector<1x256x256xf32>
    %21 = vector.shape_cast %19 : vector<256x256xf32> to vector<1x256x256xf32>
    %22 = arith.subf %20, %21 : vector<1x256x256xf32>
    %c0_29 = arith.constant 0 : index
    %c0_30 = arith.constant 0 : index
    %c0_31 = arith.constant 0 : index
    %23 = vector.load %arg6[%c0_29, %c0_30, %c0_31] : memref<1x256x256xf32, #tpu.memory_space<vmem>>, vector<1x256x256xf32>
    tpu.vector_store %arg6[%c0_29, %c0_30, %c0_31], %22 {strides = array<i32>} : memref<1x256x256xf32, #tpu.memory_space<vmem>>, vector<1x256x256xf32>,
    return
  }
  func.func @transform_0(%arg0: i32) -> (i32, i32) {
    %c0_i32 = arith.constant 0 : i32
    %c0_i32_0 = arith.constant 0 : i32
    %c0_i32_1 = arith.constant 0 : i32
    return %c0_i32, %c0_i32_0 : i32, i32
  }
  func.func @transform_1(%arg0: i32) -> (i32, i32) {
    %c0_i32 = arith.constant 0 : i32
    %c0_i32_0 = arith.constant 0 : i32
    %c0_i32_1 = arith.constant 0 : i32
    return %c0_i32, %c0_i32_0 : i32, i32
  }
  func.func @transform_2(%arg0: i32) -> (i32, i32) {
    %c0_i32 = arith.constant 0 : i32
    %c0_i32_0 = arith.constant 0 : i32
    %c0_i32_1 = arith.constant 0 : i32
    return %c0_i32, %c0_i32_0 : i32, i32
  }
  func.func @transform_3(%arg0: i32) -> (i32, i32, i32) {
    %c0_i32 = arith.constant 0 : i32
    %c0_i32_0 = arith.constant 0 : i32
    %c0_i32_1 = arith.constant 0 : i32
    return %arg0, %c0_i32, %c0_i32_0 : i32, i32, i32
  }
  func.func @transform_4(%arg0: i32) -> (i32, i32, i32) {
    %c0_i32 = arith.constant 0 : i32
    %c0_i32_0 = arith.constant 0 : i32
    %c0_i32_1 = arith.constant 0 : i32
    return %arg0, %c0_i32, %c0_i32_0 : i32, i32, i32
  }
  func.func @transform_5(%arg0: i32) -> (i32, i32, i32) {
    %c0_i32 = arith.constant 0 : i32
    %c0_i32_0 = arith.constant 0 : i32
    %c0_i32_1 = arith.constant 0 : i32
    return %arg0, %c0_i32, %c0_i32_0 : i32, i32, i32
  }
}

</mosaic_0001>

<bundles_post_ra>
// kernel: lapfusion_rgb_pyramid.1
= control target key start
LH: loop header
LB: loop body
LE: loop exit
PB: predicated region body
PF: predicated region fallthrough
CT: control target
= control target key end

     0   :  { %11 = vsyncpa [#allocation5], 0  ;;  %s2446_s0 = inlined_call_operand.hbm [shape: f32[256,128], index: 0, kind: input, shape index: {}]   ;;  %s2447_s1 = inlined_call_operand.hbm [shape: f32[256,128], index: 1, kind: input, shape index: {}]   ;;  %s2448_s2 = inlined_call_operand.hbm [shape: f32[128,256], index: 2, kind: input, shape index: {}]   ;;  %s2449_s3 = inlined_call_operand.hbm [shape: f32[6,256,256], index: 3, kind: input, shape index: {}]   ;;  %s2450_s4 = inlined_call_operand.vmem [shape: f32[6,128,128], index: 4, kind: output, shape index: {0}]   ;;  %s2451_s5 = inlined_call_operand.hbm [shape: f32[6,256,256], index: 5, kind: output, shape index: {1}]  }
   0x1   :  { %12 = vsyncpa [#allocation8], 0 }
   0x2   :  { %13 = vsyncpa [#allocation11], 0 }
   0x3   :  { %15 = vsyncpa [#allocation11 + $0x1], 0 }
   0x4   :  { %16 = vsyncpa [#allocation6], 0 }
   0x5   :  { %18 = vsyncpa [#allocation6 + $0x1], 0  ;;  %s1992_s18 = smov 0   ;;  %s1994_s19 = smov 0  }
   0x6   :  { %s1996_s20 = smov 0   ;;  %s1998_s21 = smov 0  }
   0x7 LB: > { %s2013_s22 = sadd.s32 4294967295, %s1951_s21   ;;  %s1601_s23 = sadd.s32 4294967294, %s1951_s21   ;;  %s1951_s21 = sphi %s1998_s21, %s2463_s21   ;;  %s1947_s20 = sphi %s1996_s20, %s2462_s20   ;;  %s1943_s19 = sphi %s1994_s19, %s2461_s19   ;;  %s1939_s18 = sphi %s1992_s18, %s2460_s18  }
   0x8   : > { %p107_p0 = scmp.ne.s32.totalorder %s1943_s19, %s1939_s18  ;;  %p108_p1 = scmp.eq.s32.totalorder %s2013_s22, 0 }
   0x9   : > { %p157_p2 = scmp.eq.s32.totalorder %s2013_s22, 5  ;;  %p163_p3 = scmp.eq.s32.totalorder %s1601_s23, 5 }
   0xa   : > { %p2022_p4 = por %p108_p1, %p107_p0  ;;  %p1602_p5 = scmp.ge.s32.totalorder %s1951_s21, 1 }
   0xb   : > { %p2027_p6 = por %p163_p3, %p107_p0  ;;  %p170_p7 = scmp.lt.s32.totalorder %s1951_s21, 7 }
   0xc   : > { %s195_s29 = sshll.u32 %s2447_s1, 4  ;;  %s1953_s30 = smov [#allocation7]   ;;  %s196_s29 = int_to_ptr.hbm [resolvable:$true] %s195_s29 }
   0xd   : > { %p2032_p8 = pnand %p1602_p5, %p170_p7  ;;  %s197_s6 = sshll.u32 %s1953_s30, 4  ;;  %s198_s6 = int_to_ptr.vmem [resolvable:$true] %s197_s6 }
   0xe   : > { %s181_s10 = sshll.u32 %s2446_s0, 4  ;;  %s1954_s11 = smov 128   ;;  %s182_s10 = int_to_ptr.hbm [resolvable:$true] %s181_s10 }
   0xf   : > { %p1690_p9 = pneg %p2032_p8  ;;  %s1955_s12 = smov 8  }
  0x10   : > { %s1956_s13 = smov [#allocation4]   ;;  %s209_s17 = sshll.u32 %s2448_s2, 4  ;;  %s210_s17 = int_to_ptr.hbm [resolvable:$true] %s209_s17 }
  0x11   : > { %p2043_p10 = pnand %p1690_p9, %p108_p1  ;;  %s183_s14 = sshll.u32 %s1956_s13, 4  ;;  %s184_s14 = int_to_ptr.vmem [resolvable:$true] %s183_s14 }
  0x12   : > { %s1957_s23 = smov [#allocation9]   ;;  %s2452_s28 = smov 256  }
  0x13   : > { %1696 = dma.hbm_to_vmem [thread:$0]  (!%p2043_p10), %s196_s29, 4096, %s198_s6, [#allocation8], %s1954_s11, %s1954_s11, %s1955_s12  }
  0x14   : > { %1693 = dma.hbm_to_vmem [thread:$0]  (!%p2043_p10), %s182_s10, 4096, %s184_s14, [#allocation5], %s1954_s11, %s1954_s11, %s1955_s12  }
  0x15   : > { %s211_s27 = sshll.u32 %s1957_s23, 4  ;;  %s1959_s29 = smov 16   ;;  %s212_s27 = int_to_ptr.vmem [resolvable:$true] %s211_s27 }
  0x16   : > { %1699 = dma.hbm_to_vmem [thread:$0]  (!%p2043_p10), %s210_s17, 4096, %s212_s27, [#allocation8], %s2452_s28, %s2452_s28, %s1959_s29  }
  0x17   : > { %s2063_s30 = sadd.s32 1, %s1951_s21   ;;  %s94_s8 = sadd.s32 1, %s1947_s20 }
  0x18   : > { %s91_s6 = ssub.s32 %s1951_s21, %s2063_s30  ;;  %p101_p12 = scmp.ne.s32.totalorder %s1947_s20, %s1943_s19 }
  0x19   : > { %p92_p11 = scmp.eq.s32.totalorder %s91_s6, 0  ;;  %p102_p13 = scmp.eq.s32.totalorder %s1951_s21, 0 }
  0x1a   : > { %p2076_p0 = por %p157_p2, %p101_p12  ;;  %p1711_p3 = scmp.lt.s32.totalorder %s1951_s21, 6 }
  0x1b   : > { %s2072_s9 = scalar_select %p92_p11, %s1947_s20, %s94_s8  }
  0x1c   : > { %s225_s7 = sand.u32 1, %s1947_s20   ;;  %s1623_s11 = sshll.u32 %s1951_s21, 9 }
  0x1d   : > { %p103_p5 = por %p102_p13, %p101_p12  ;;  %s1607_s12 = sshll.u32 %s225_s7, 9 }
  0x1e   : > { %s234_s15 = scalar_lea.hbm %s2449_s3, %s1623_s11  ;;  %s229_s17 = scalar_lea.vmem [#allocation10], %s1607_s12 }
  0x1f   : > { %s235_s16 = sshll.u32 %s234_s15, 4  ;;  %s237_s23 = sshll.u32 %s229_s17, 4  ;;  %s236_s16 = int_to_ptr.hbm [resolvable:$true] %s235_s16  ;;  %s238_s23 = int_to_ptr.vmem [resolvable:$true] %s237_s23 }
  0x20   : > { %p2086_p7 = pnand %p1711_p3, %p103_p5  ;;  %s226_s6 = scalar_lea.sflag [#allocation11], %s225_s7 }
  0x21   : > { %s1847_s8 = sshra.s32 %s236_s16, 4  ;;  %s1854_s12 = scalar_lea.hbm %s2449_s3, 3072  ;;  %s1848_s8 = int_to_ptr.hbm [resolvable:$true] %s1847_s8 }
  0x22   : > { %s1849_s28 = scalar_lea.hbm %s1848_s8, 512  ;;  %p1851_p9 = pneg %p2086_p7 }
  0x23   : > { %p1850_p2 = scmp.ne.s32.totalorder %s1848_s8, %s1849_s28  ;;  %p1855_p12 = scmp.lt.s32.totalorder %s1848_s8, %s2449_s3 }
  0x24   : > { %p1856_p13 = scmp.lt.s32.totalorder %s1854_s12, %s1849_s28 }
  0x25   : > { %p1852_p10 = pnand %p1851_p9, %p1850_p2 }
  0x26   : > { %p1857_p3 = por %p1856_p13, %p1855_p12 }
  0x27   : > { %p1853_p11 = pneg %p1852_p10 }
  0x29   : > { %p1858_p5 = pnand %p1857_p3, %p1853_p11 }
  0x2b   : > { %1861 = shalt.err (!%p1858_p5)
}
  0x2c   : > { %s2459_s7 = smov 256   ;;  %249 = sbr.rel (%p2032_p8) target bundleno = 1089 (0x441), region = 36 }
  0x2d   : > { %1703 = dma.hbm_to_vmem [thread:$0]  (!%p2086_p7), %s236_s16, 8192, %s238_s23, %s226_s6, %s2459_s7, %s2459_s7, %s1959_s29  }
  0x31   : > { %1922 = dma.done.wait (%p108_p1), [#allocation5], 4096  }
  0x32   : > { %1924 = vsyncadd (%p108_p1), [#allocation5], 4294963200 }
  0x33   : > { %1926 = dma.done.wait (%p108_p1), [#allocation8], 8192  }
  0x34   : > { %1928 = vsyncadd (%p108_p1), [#allocation8], 4294959104  ;;  %s2114_s28 = sand.u32 1, %s1943_s19  }
  0x35   : > { %s1614_s26 = sshll.u32 %s2114_s28, 9  ;;  %s267_s29 = scalar_lea.sflag [#allocation11], %s2114_s28 }
  0x36   : > { %s2120_s16 = scalar_lea.vmem [#allocation10], %s1614_s26 }
  0x37   : > { %1930 = dma.done.wait (%p2022_p4), %s267_s29, 8192  }
  0x38   : > { %1932 = vsyncadd (%p2022_p4), %s267_s29, 4294959104  ;;  %v387_v0 = vld [vmem:[#allocation7 + $0x78] sm:$0xff]  ;;  %v386_v1 = vld [vmem:[#allocation7 + $0x70] sm:$0xff]  ;;  %p303_p1 = scmp.lt.s32.totalorder %s2013_s22, 5  ;;  %s2284_s8 = scalar_lea.vmem [#allocation12], %s1614_s26 }
  0x39   : > { %1626 = vmatpush.msra.mxu1 %v387_v0  ;;  %404 = vmatpush.msra.mxu0 %v387_v0  ;;  %v385_v2 = vld [vmem:[#allocation7 + $0x68] sm:$0xff]  ;;  %v384_v3 = vld [vmem:[#allocation7 + $0x60] sm:$0xff]  ;;  %v383_v4 = vld [vmem:[#allocation7 + $0x58] sm:$0xff]  ;;  %s1625_s11 = sshll.u32 %s2013_s22, 9  ;;  %s1469_s15 = sshll.u32 %s2284_s8, 4  ;;  %s1470_s15 = int_to_ptr.vmem [resolvable:$true] %s1469_s15 }
  0x3a   : > { %1627 = vmatpush.msra.mxu2 %v387_v0  ;;  %1628 = vmatpush.msra.mxu3 %v387_v0  ;;  %v382_v5 = vld [vmem:[#allocation7 + $0x50] sm:$0xff]  ;;  %v381_v6 = vld [vmem:[#allocation7 + $0x48] sm:$0xff]  ;;  %v380_v7 = vld [vmem:[#allocation7 + $0x40] sm:$0xff]  ;;  %s304_s24 = scalar_select %p303_p1, %s2013_s22, 5 }
  0x3b   : > { %1629 = vmatpush.msra.mxu1 %v386_v1  ;;  %405 = vmatpush.msra.mxu0 %v386_v1  ;;  %v379_v8 = vld [vmem:[#allocation7 + $0x38] sm:$0xff]  ;;  %v378_v9 = vld [vmem:[#allocation7 + $0x30] sm:$0xff]  ;;  %v377_v10 = vld [vmem:[#allocation7 + $0x28] sm:$0xff]  ;;  %s1468_s14 = scalar_lea.hbm %s2451_s5, %s1625_s11  ;;  %s1454_s22 = scalar_lea.sflag [#allocation6], %s2114_s28 }
  0x3c   : > { %1630 = vmatpush.msra.mxu2 %v386_v1  ;;  %1631 = vmatpush.msra.mxu3 %v386_v1  ;;  %v376_v11 = vld [vmem:[#allocation7 + $0x20] sm:$0xff]  ;;  %v375_v12 = vld [vmem:[#allocation7 + $0x18] sm:$0xff]  ;;  %v374_v13 = vld [vmem:[#allocation7 + $0x10] sm:$0xff]  ;;  %s1624_s17 = sshll.u32 %s304_s24, 7  ;;  %s1471_s7 = sshll.u32 %s1468_s14, 4  ;;  %s1472_s7 = int_to_ptr.hbm [resolvable:$true] %s1471_s7 }
  0x3d   : > { %1632 = vmatpush.msra.mxu1 %v385_v2  ;;  %406 = vmatpush.msra.mxu0 %v385_v2  ;;  %v373_v14 = vld [vmem:[#allocation7 + $0x8] sm:$0xff]  ;;  %v372_v15 = vld [vmem:[#allocation7] sm:$0xff]  ;;  %v403_v17 = vld [vmem:[#allocation7 + $0xf8] sm:$0xff]  ;;  %s2190_s6 = scalar_lea.vmem %s2450_s4, %s1624_s17  ;;  %s1891_s26 = sshra.s32 %s1472_s7, 4  ;;  %s1892_s26 = int_to_ptr.hbm [resolvable:$true] %s1891_s26 }
  0x3e   : > { %1633 = vmatpush.msra.mxu2 %v385_v2  ;;  %1634 = vmatpush.msra.mxu3 %v385_v2  ;;  %v324_v16 = vld [vmem:[%s2120_s16 + $0x80] sm:$0xff]  ;;  %v402_v18 = vld [vmem:[#allocation7 + $0xf0] sm:$0xff]  ;;  %v401_v19 = vld [vmem:[#allocation7 + $0xe8] sm:$0xff]  ;;  %s1893_s29 = scalar_lea.hbm %s1892_s26, 512  ;;  %s1897_s23 = scalar_lea.hbm %s2451_s5, 3072 }
  0x3f   : > { %1635 = vmatpush.msra.mxu1 %v384_v3  ;;  %407 = vmatpush.msra.mxu0 %v384_v3  ;;  %v400_v20 = vld [vmem:[#allocation7 + $0xe0] sm:$0xff]  ;;  %v326_v21 = vld [vmem:[%s2120_s16 + $0x90] sm:$0xff]  ;;  %v399_v22 = vld [vmem:[#allocation7 + $0xd8] sm:$0xff]  ;;  %p1894_p4 = scmp.ne.s32.totalorder %s1892_s26, %s1893_s29  ;;  %p1898_p2 = scmp.lt.s32.totalorder %s1892_s26, %s2451_s5 }
  0x40   : > { %1636 = vmatpush.msra.mxu2 %v384_v3  ;;  %1637 = vmatpush.msra.mxu3 %v384_v3  ;;  %v398_v23 = vld [vmem:[#allocation7 + $0xd0] sm:$0xff]  ;;  %v397_v24 = vld [vmem:[#allocation7 + $0xc8] sm:$0xff]  ;;  %v396_v25 = vld [vmem:[#allocation7 + $0xc0] sm:$0xff]  ;;  %p1899_p9 = scmp.lt.s32.totalorder %s1897_s23, %s1893_s29 }
  0x41   : > { %1638 = vmatpush.msra.mxu1 %v383_v4  ;;  %408 = vmatpush.msra.mxu0 %v383_v4  ;;  %v328_v26 = vld [vmem:[%s2120_s16 + $0xa0] sm:$0xff]  ;;  %v395_v27 = vld [vmem:[#allocation7 + $0xb8] sm:$0xff]  ;;  %v394_v28 = vld [vmem:[#allocation7 + $0xb0] sm:$0xff]  ;;  %p1895_p8 = pnand %p1894_p4, %p2076_p0 }
  0x42   : > { %1639 = vmatpush.msra.mxu2 %v383_v4  ;;  %1640 = vmatpush.msra.mxu3 %v383_v4  ;;  %v393_v29 = vld [vmem:[#allocation7 + $0xa8] sm:$0xff]  ;;  %v392_v30 = vld [vmem:[#allocation7 + $0xa0] sm:$0xff]  ;;  %v330_v31 = vld [vmem:[%s2120_s16 + $0xb0] sm:$0xff]  ;;  %p1900_p10 = por %p1899_p9, %p1898_p2 }
  0x43   : > { %1641 = vmatpush.msra.mxu1 %v382_v5  ;;  %409 = vmatpush.msra.mxu0 %v382_v5  ;;  %v391_v32 = vld [vmem:[#allocation7 + $0x98] sm:$0xff]  ;;  %v390_v33 = vld [vmem:[#allocation7 + $0x90] sm:$0xff]  ;;  %v308_v34 = vld [vmem:[%s2120_s16] sm:$0xff]  ;;  %p1896_p7 = pneg %p1895_p8 }
  0x44   : > { %1642 = vmatpush.msra.mxu2 %v382_v5  ;;  %1643 = vmatpush.msra.mxu3 %v382_v5  ;;  %v389_v35 = vld [vmem:[#allocation7 + $0x88] sm:$0xff]  ;;  %v388_v36 = vld [vmem:[#allocation7 + $0x80] sm:$0xff]  ;;  %v310_v38 = vld [vmem:[%s2120_s16 + $0x10] sm:$0xff] }
  0x45   : > { %1644 = vmatpush.msra.mxu1 %v381_v6  ;;  %410 = vmatpush.msra.mxu0 %v381_v6  ;;  %v332_v37 = vld [vmem:[%s2120_s16 + $0xc0] sm:$0xff]  ;;  %v334_v39 = vld [vmem:[%s2120_s16 + $0xd0] sm:$0xff]  ;;  %v309_v45 = vld [vmem:[%s2120_s16 + $0x8] sm:$0xff]  ;;  %p1901_p11 = pnand %p1900_p10, %p1896_p7 }
  0x46   : > { %1645 = vmatpush.msra.mxu2 %v381_v6  ;;  %1646 = vmatpush.msra.mxu3 %v381_v6  ;;  %v312_v40 = vld [vmem:[%s2120_s16 + $0x20] sm:$0xff]  ;;  %v314_v42 = vld [vmem:[%s2120_s16 + $0x30] sm:$0xff]  ;;  %v311_v47 = vld [vmem:[%s2120_s16 + $0x18] sm:$0xff] }
  0x47   : > { %1647 = vmatpush.msra.mxu1 %v380_v7  ;;  %411 = vmatpush.msra.mxu0 %v380_v7  ;;  %v336_v41 = vld [vmem:[%s2120_s16 + $0xe0] sm:$0xff]  ;;  %v338_v43 = vld [vmem:[%s2120_s16 + $0xf0] sm:$0xff]  ;;  %v313_v49 = vld [vmem:[%s2120_s16 + $0x28] sm:$0xff] }
  0x48   : > { %1648 = vmatpush.msra.mxu2 %v380_v7  ;;  %1649 = vmatpush.msra.mxu3 %v380_v7  ;;  %v316_v44 = vld [vmem:[%s2120_s16 + $0x40] sm:$0xff]  ;;  %v318_v46 = vld [vmem:[%s2120_s16 + $0x50] sm:$0xff]  ;;  %v315_v51 = vld [vmem:[%s2120_s16 + $0x38] sm:$0xff] }
  0x49   : > { %1650 = vmatpush.msra.mxu1 %v379_v8  ;;  %412 = vmatpush.msra.mxu0 %v379_v8  ;;  %v320_v48 = vld [vmem:[%s2120_s16 + $0x60] sm:$0xff]  ;;  %v322_v50 = vld [vmem:[%s2120_s16 + $0x70] sm:$0xff]  ;;  %v317_v52 = vld [vmem:[%s2120_s16 + $0x48] sm:$0xff] }
  0x4a   : > { %1651 = vmatpush.msra.mxu2 %v379_v8  ;;  %1652 = vmatpush.msra.mxu3 %v379_v8  ;;  %v319_v53 = vld [vmem:[%s2120_s16 + $0x58] sm:$0xff]  ;;  %v321_v54 = vld [vmem:[%s2120_s16 + $0x68] sm:$0xff]  ;;  %v340_v0 = vld [vmem:[%s2120_s16 + $0x100] sm:$0xff] }
  0x4b   : > { %1653 = vmatpush.msra.mxu1 %v378_v9  ;;  %413 = vmatpush.msra.mxu0 %v378_v9  ;;  %v323_v55 = vld [vmem:[%s2120_s16 + $0x78] sm:$0xff]  ;;  %v325_v57 = vld [vmem:[%s2120_s16 + $0x88] sm:$0xff]  ;;  %v342_v3 = vld [vmem:[%s2120_s16 + $0x110] sm:$0xff] }
  0x4c   : > { %1654 = vmatpush.msra.mxu2 %v378_v9  ;;  %1655 = vmatpush.msra.mxu3 %v378_v9  ;;  %v327_v59 = vld [vmem:[%s2120_s16 + $0x98] sm:$0xff]  ;;  %v329_v61 = vld [vmem:[%s2120_s16 + $0xa8] sm:$0xff]  ;;  %v344_v6 = vld [vmem:[%s2120_s16 + $0x120] sm:$0xff] }
  0x4d   : > { %1656 = vmatpush.msra.mxu1 %v377_v10  ;;  %414 = vmatpush.msra.mxu0 %v377_v10  ;;  %v331_v63 = vld [vmem:[%s2120_s16 + $0xb8] sm:$0xff]  ;;  %v333_v2 = vld [vmem:[%s2120_s16 + $0xc8] sm:$0xff] }
  0x4e   : > { %1657 = vmatpush.msra.mxu2 %v377_v10  ;;  %1658 = vmatpush.msra.mxu3 %v377_v10  ;;  %v335_v5 = vld [vmem:[%s2120_s16 + $0xd8] sm:$0xff]  ;;  %v337_v8 = vld [vmem:[%s2120_s16 + $0xe8] sm:$0xff]  ;;  %v346_v10 = vld [vmem:[%s2120_s16 + $0x130] sm:$0xff] }
  0x4f   : > { %1659 = vmatpush.msra.mxu1 %v376_v11  ;;  %415 = vmatpush.msra.mxu0 %v376_v11 }
  0x50   : > { %1660 = vmatpush.msra.mxu2 %v376_v11  ;;  %1661 = vmatpush.msra.mxu3 %v376_v11 }
  0x51   : > { %1662 = vmatpush.msra.mxu1 %v375_v12  ;;  %416 = vmatpush.msra.mxu0 %v375_v12 }
  0x52   : > { %1663 = vmatpush.msra.mxu2 %v375_v12  ;;  %1664 = vmatpush.msra.mxu3 %v375_v12  ;;  %v339_v12 = vld [vmem:[%s2120_s16 + $0xf8] sm:$0xff] }
  0x53   : > { %1665 = vmatpush.msra.mxu1 %v374_v13  ;;  %417 = vmatpush.msra.mxu0 %v374_v13 }
  0x54   : > { %1666 = vmatpush.msra.mxu2 %v374_v13  ;;  %1667 = vmatpush.msra.mxu3 %v374_v13 }
  0x55   : > { %1668 = vmatpush.msra.mxu1 %v373_v14  ;;  %418 = vmatpush.msra.mxu0 %v373_v14 }
  0x56   : > { %1669 = vmatpush.msra.mxu2 %v373_v14  ;;  %1670 = vmatpush.msra.mxu3 %v373_v14  ;;  %v348_v14 = vld [vmem:[%s2120_s16 + $0x140] sm:$0xff] }
  0x57   : > { %1671 = vmatpush.msra.mxu1 %v372_v15  ;;  %419 = vmatpush.msra.mxu0 %v372_v15 }
  0x58   : > { %444 = vmatmul.f32.vlgmr.msra.gmra.mxu1 %v324_v16  ;;  %1672 = vmatpush.msra.mxu2 %v372_v15  ;;  %v341_v16 = vld [vmem:[%s2120_s16 + $0x108] sm:$0xff] }
  0x59   : > { %517 = vmatpush.msrb.mxu1 %v403_v17  ;;  %1673 = vmatpush.msra.mxu3 %v372_v15 }
  0x5a   : > { %420 = vmatmul.f32.vlgmr.msra.gmra.mxu0 %v308_v34  ;;  %468 = vmatmul.f32.vlgmr.msra.gmra.mxu2 %v340_v0  ;;  %v347_v34 = vld [vmem:[%s2120_s16 + $0x138] sm:$0xff] }
  0x5b   : > { %518 = vmatpush.msrb.mxu1 %v402_v18  ;;  %v350_v18 = vld [vmem:[%s2120_s16 + $0x150] sm:$0xff] }
  0x5d   : > { %519 = vmatpush.msrb.mxu1 %v401_v19 }
  0x5f   : > { %520 = vmatpush.msrb.mxu1 %v400_v20 }
  0x60   : > { %447 = vmatmul.f32.gmra.mxu1 %v326_v21  ;;  %v343_v21 = vld [vmem:[%s2120_s16 + $0x118] sm:$0xff] }
  0x61   : > { %521 = vmatpush.msrb.mxu1 %v399_v22 }
  0x62   : > { %423 = vmatmul.f32.gmra.mxu0 %v310_v38  ;;  %471 = vmatmul.f32.gmra.mxu2 %v342_v3  ;;  %v355_v3 = vld [vmem:[%s2120_s16 + $0x178] sm:$0xff] }
  0x63   : > { %522 = vmatpush.msrb.mxu1 %v398_v23  ;;  %v352_v23 = vld [vmem:[%s2120_s16 + $0x160] sm:$0xff] }
  0x65   : > { %523 = vmatpush.msrb.mxu1 %v397_v24 }
  0x67   : > { %524 = vmatpush.msrb.mxu1 %v396_v25 }
  0x68   : > { %450 = vmatmul.f32.gmra.mxu1 %v328_v26  ;;  %v345_v26 = vld [vmem:[%s2120_s16 + $0x128] sm:$0xff] }
  0x69   : > { %525 = vmatpush.msrb.mxu1 %v395_v27 }
  0x6a   : > { %426 = vmatmul.f32.gmra.mxu0 %v312_v40  ;;  %474 = vmatmul.f32.gmra.mxu2 %v344_v6  ;;  %v364_v6 = vld [vmem:[%s2120_s16 + $0x1c0] sm:$0xff] }
  0x6b   : > { %526 = vmatpush.msrb.mxu1 %v394_v28 }
  0x6d   : > { %527 = vmatpush.msrb.mxu1 %v393_v29 }
  0x6f   : > { %528 = vmatpush.msrb.mxu1 %v392_v30 }
  0x70   : > { %453 = vmatmul.f32.gmra.mxu1 %v330_v31  ;;  %v354_v31 = vld [vmem:[%s2120_s16 + $0x170] sm:$0xff] }
  0x71   : > { %529 = vmatpush.msrb.mxu1 %v391_v32 }
  0x72   : > { %429 = vmatmul.f32.gmra.mxu0 %v314_v42  ;;  %477 = vmatmul.f32.gmra.mxu2 %v346_v10 }
  0x73   : > { %530 = vmatpush.msrb.mxu1 %v390_v33 }
  0x75   : > { %531 = vmatpush.msrb.mxu1 %v389_v35 }
  0x77   : > { %532 = vmatpush.msrb.mxu1 %v388_v36 }
  0x78   : > { %456 = vmatmul.f32.gmra.mxu1 %v332_v37  ;;  %v356_v37 = vld [vmem:[%s2120_s16 + $0x180] sm:$0xff] }
  0x79   : > { %492 = vmatmul.f32.vlgmr.msra.gmra.mxu3 %v356_v37 }
  0x7a   : > { %432 = vmatmul.f32.gmra.mxu0 %v316_v44  ;;  %480 = vmatmul.f32.gmra.mxu2 %v348_v14 }
  0x80   : > { %459 = vmatmul.f32.gmra.mxu1 %v334_v39  ;;  %v349_v39 = vld [vmem:[%s2120_s16 + $0x148] sm:$0xff] }
  0x82   : > { %435 = vmatmul.f32.gmra.mxu0 %v318_v46  ;;  %483 = vmatmul.f32.gmra.mxu2 %v350_v18  ;;  %v359_v18 = vld [vmem:[%s2120_s16 + $0x198] sm:$0xff] }
  0x88   : > { %462 = vmatmul.f32.gmra.mxu1 %v336_v41 }
  0x8a   : > { %438 = vmatmul.f32.gmra.mxu0 %v320_v48  ;;  %486 = vmatmul.f32.gmra.mxu2 %v352_v23  ;;  %v351_v48 = vld [vmem:[%s2120_s16 + $0x158] sm:$0xff] }
  0x90   : > { %465 = vmatmul.f32.gmra.mxu1 %v338_v43 }
  0x92   : > { %441 = vmatmul.f32.gmra.mxu0 %v322_v50  ;;  %489 = vmatmul.f32.gmra.mxu2 %v354_v31 }
  0x98   : > { %533 = vmatmul.f32.vlgmr.msrb.gmra.mxu1 %v309_v45  ;;  %v358_v45 = vld [vmem:[%s2120_s16 + $0x190] sm:$0xff] }
  0x99   : > { %495 = vmatmul.f32.gmra.mxu3 %v358_v45 }
  0xa0   : > { %536 = vmatmul.f32.gmra.mxu1 %v311_v47 }
  0xa8   : > { %539 = vmatmul.f32.gmra.mxu1 %v313_v49 }
  0xb0   : > { %542 = vmatmul.f32.gmra.mxu1 %v315_v51  ;;  %v360_v51 = vld [vmem:[%s2120_s16 + $0x1a0] sm:$0xff] }
  0xb1   : > { %498 = vmatmul.f32.gmra.mxu3 %v360_v51 }
  0xb8   : > { %545 = vmatmul.f32.gmra.mxu1 %v317_v52 }
  0xc0   : > { %548 = vmatmul.f32.gmra.mxu1 %v319_v53  ;;  %v353_v53 = vld [vmem:[%s2120_s16 + $0x168] sm:$0xff] }
  0xc8   : > { %551 = vmatmul.f32.gmra.mxu1 %v321_v54 }
  0xd0   : > { %554 = vmatmul.f32.gmra.mxu1 %v323_v55 }
  0xd5   : > { %v2150_v56 = vpop.f32.mrf.mxu1 }
  0xd7   : > { %v421_v9 = vpop.f32.mrf.mxu0 }
  0xd8   : > { %557 = vmatmul.f32.gmra.mxu1 %v325_v57 }
  0xdd   : > { %v2153_v58 = vpop.f32.mrf.mxu1 }
  0xdf   : > { %v424_v13 = vpop.f32.mrf.mxu0 }
  0xe0   : > { %560 = vmatmul.f32.gmra.mxu1 %v327_v59 }
  0xe5   : > { %v2156_v60 = vpop.f32.mrf.mxu1 }
  0xe7   : > { %v427_v19 = vpop.f32.mrf.mxu0 }
  0xe8   : > { %563 = vmatmul.f32.gmra.mxu1 %v329_v61  ;;  %v362_v61 = vld [vmem:[%s2120_s16 + $0x1b0] sm:$0xff] }
  0xe9   : > { %501 = vmatmul.f32.gmra.mxu3 %v362_v61 }
  0xed   : > { %v2159_v62 = vpop.f32.mrf.mxu1 }
  0xef   : > { %v430_v24 = vpop.f32.mrf.mxu0 }
  0xf0   : > { %566 = vmatmul.f32.gmra.mxu1 %v331_v63 }
  0xf1   : > { %504 = vmatmul.f32.gmra.mxu3 %v364_v6 }
  0xf5   : > { %v2163_v1 = vpop.f32.mrf.mxu1 }
  0xf7   : > { %v433_v35 = vpop.f32.mrf.mxu0 }
  0xf8   : > { %569 = vmatmul.f32.gmra.mxu1 %v333_v2 }
  0xfd   : > { %v2167_v4 = vpop.f32.mrf.mxu1 }
  0xff   : > { %v436_v43 = vpop.f32.mrf.mxu0 }
 0x100   : > { %572 = vmatmul.f32.gmra.mxu1 %v335_v5 }
 0x105   : > { %v2171_v7 = vpop.f32.mrf.mxu1 }
 0x107   : > { %v439_v50 = vpop.f32.mrf.mxu0 }
 0x108   : > { %575 = vmatmul.f32.gmra.mxu1 %v337_v8 }
 0x10d   : > { %v2175_v11 = vpop.f32.mrf.mxu1 }
 0x10f   : > { %v442_v0 = vpop.f32.mrf.mxu0 }
 0x110   : > { %578 = vmatmul.f32.gmra.mxu1 %v339_v12 }
 0x115   : > { %v534_v15 = vpop.f32.mrf.mxu1 }
 0x116   : > { %v535_v17 = vadd.f32 %v534_v15, %v421_v9  ;;  %v357_v9 = vld [vmem:[%s2120_s16 + $0x188] sm:$0xff]  ;;  %v366_v15 = vld [vmem:[%s2120_s16 + $0x1d0] sm:$0xff] }
 0x117   : > { %507 = vmatmul.f32.gmra.mxu3 %v366_v15 }
 0x118   : > { %630 = vst [vmem:[#allocation2] sm:$0xff] %v535_v17  ;;  %581 = vmatmul.f32.gmra.mxu1 %v341_v16 }
 0x11d   : > { %v537_v20 = vpop.f32.mrf.mxu1 }
 0x11e   : > { %v538_v22 = vadd.f32 %v537_v20, %v424_v13 }
 0x120   : > { %631 = vst [vmem:[#allocation2 + $0x8] sm:$0xff] %v538_v22  ;;  %584 = vmatmul.f32.gmra.mxu1 %v343_v21  ;;  %v361_v21 = vld [vmem:[%s2120_s16 + $0x1a8] sm:$0xff] }
 0x125   : > { %v540_v25 = vpop.f32.mrf.mxu1 }
 0x126   : > { %v541_v27 = vadd.f32 %v540_v25, %v427_v19 }
 0x127   : > { %v662_v28 = vld [vmem:[#allocation2] ss:$2 sm:$0xff]  ;;  %v694_v29 = vld [vmem:[#allocation2 + $0x1] ss:$2 sm:$0xff] }
 0x128   : > { %v725_v30 = vadd.f32 %v694_v29, %v662_v28  ;;  %632 = vst [vmem:[#allocation2 + $0x10] sm:$0xff] %v541_v27  ;;  %587 = vmatmul.f32.gmra.mxu1 %v345_v26  ;;  %v370_v26 = vld [vmem:[%s2120_s16 + $0x1f0] sm:$0xff]  ;;  %v363_v28 = vld [vmem:[%s2120_s16 + $0x1b8] sm:$0xff] }
 0x12a   : > { %v2192_v32 = vmul.f32 0.5, %v725_v30  ;;  %v365_v30 = vld [vmem:[%s2120_s16 + $0x1c8] sm:$0xff] }
 0x12c   : > { %757 = vst [vmem:[%s2190_s6] sm:$0xff] %v2192_v32 }
 0x12d   : > { %v543_v33 = vpop.f32.mrf.mxu1 }
 0x12e   : > { %v544_v36 = vadd.f32 %v543_v33, %v430_v24 }
 0x130   : > { %633 = vst [vmem:[#allocation2 + $0x18] sm:$0xff] %v544_v36  ;;  %590 = vmatmul.f32.gmra.mxu1 %v347_v34 }
 0x135   : > { %v546_v38 = vpop.f32.mrf.mxu1 }
 0x136   : > { %v547_v40 = vadd.f32 %v546_v38, %v433_v35  ;;  %v367_v38 = vld [vmem:[%s2120_s16 + $0x1d8] sm:$0xff] }
 0x137   : > { %v664_v41 = vld [vmem:[#allocation2 + $0x10] ss:$2 sm:$0xff]  ;;  %v696_v42 = vld [vmem:[#allocation2 + $0x11] ss:$2 sm:$0xff] }
 0x138   : > { %v726_v44 = vadd.f32 %v696_v42, %v664_v41  ;;  %634 = vst [vmem:[#allocation2 + $0x20] sm:$0xff] %v547_v40  ;;  %593 = vmatmul.f32.gmra.mxu1 %v349_v39  ;;  %v369_v40 = vld [vmem:[%s2120_s16 + $0x1e8] sm:$0xff] }
 0x13a   : > { %v2200_v46 = vmul.f32 0.5, %v726_v44 }
 0x13c   : > { %758 = vst [vmem:[%s2190_s6 + $0x8] sm:$0xff] %v2200_v46 }
 0x13d   : > { %v549_v47 = vpop.f32.mrf.mxu1 }
 0x13e   : > { %v550_v49 = vadd.f32 %v549_v47, %v436_v43 }
 0x140   : > { %635 = vst [vmem:[#allocation2 + $0x28] sm:$0xff] %v550_v49  ;;  %596 = vmatmul.f32.gmra.mxu1 %v351_v48  ;;  %v371_v48 = vld [vmem:[%s2120_s16 + $0x1f8] sm:$0xff] }
 0x145   : > { %v552_v52 = vpop.f32.mrf.mxu1 }
 0x146   : > { %v553_v54 = vadd.f32 %v552_v52, %v439_v50 }
 0x147   : > { %v666_v55 = vld [vmem:[#allocation2 + $0x20] ss:$2 sm:$0xff]  ;;  %v698_v57 = vld [vmem:[#allocation2 + $0x21] ss:$2 sm:$0xff] }
 0x148   : > { %v727_v59 = vadd.f32 %v698_v57, %v666_v55  ;;  %636 = vst [vmem:[#allocation2 + $0x30] sm:$0xff] %v553_v54  ;;  %599 = vmatmul.f32.gmra.mxu1 %v353_v53 }
 0x14a   : > { %v2208_v63 = vmul.f32 0.5, %v727_v59 }
 0x14c   : > { %759 = vst [vmem:[%s2190_s6 + $0x10] sm:$0xff] %v2208_v63 }
 0x14d   : > { %v555_v2 = vpop.f32.mrf.mxu1 }
 0x14e   : > { %v556_v5 = vadd.f32 %v555_v2, %v442_v0 }
 0x150   : > { %637 = vst [vmem:[#allocation2 + $0x38] sm:$0xff] %v556_v5  ;;  %602 = vmatmul.f32.gmra.mxu1 %v355_v3 }
 0x155   : > { %v558_v8 = vpop.f32.mrf.mxu1 }
 0x156   : > { %v559_v10 = vadd.f32 %v558_v8, %v2150_v56  ;;  %v368_v56 = vld [vmem:[%s2120_s16 + $0x1e0] sm:$0xff] }
 0x157   : > { %v668_v12 = vld [vmem:[#allocation2 + $0x30] ss:$2 sm:$0xff]  ;;  %v700_v13 = vld [vmem:[#allocation2 + $0x31] ss:$2 sm:$0xff]  ;;  %510 = vmatmul.f32.gmra.mxu3 %v368_v56 }
 0x158   : > { %v728_v14 = vadd.f32 %v700_v13, %v668_v12  ;;  %638 = vst [vmem:[#allocation2 + $0x40] sm:$0xff] %v559_v10  ;;  %605 = vmatmul.f32.gmra.mxu1 %v357_v9 }
 0x15a   : > { %v2217_v16 = vmul.f32 0.5, %v728_v14 }
 0x15c   : > { %760 = vst [vmem:[%s2190_s6 + $0x18] sm:$0xff] %v2217_v16 }
 0x15d   : > { %v561_v17 = vpop.f32.mrf.mxu1 }
 0x15e   : > { %v562_v19 = vadd.f32 %v561_v17, %v2153_v58 }
 0x15f   : > { %513 = vmatmul.f32.gmra.mxu3 %v370_v26 }
 0x160   : > { %639 = vst [vmem:[#allocation2 + $0x48] sm:$0xff] %v562_v19  ;;  %608 = vmatmul.f32.gmra.mxu1 %v359_v18 }
 0x165   : > { %v564_v20 = vpop.f32.mrf.mxu1 }
 0x166   : > { %v565_v22 = vadd.f32 %v564_v20, %v2156_v60 }
 0x167   : > { %v670_v23 = vld [vmem:[#allocation2 + $0x40] ss:$2 sm:$0xff]  ;;  %v702_v24 = vld [vmem:[#allocation2 + $0x41] ss:$2 sm:$0xff] }
 0x168   : > { %v729_v25 = vadd.f32 %v702_v24, %v670_v23  ;;  %640 = vst [vmem:[#allocation2 + $0x50] sm:$0xff] %v565_v22  ;;  %611 = vmatmul.f32.gmra.mxu1 %v361_v21  ;;  %v493_v23 = vpop.f32.mrf.mxu3 }
 0x16a   : > { %v2227_v27 = vmul.f32 0.5, %v729_v25 }
 0x16c   : > { %761 = vst [vmem:[%s2190_s6 + $0x20] sm:$0xff] %v2227_v27 }
 0x16d   : > { %v567_v58 = vpop.f32.mrf.mxu1 }
 0x16e   : > { %v568_v29 = vadd.f32 %v567_v58, %v2159_v62 }
 0x170   : > { %641 = vst [vmem:[#allocation2 + $0x58] sm:$0xff] %v568_v29  ;;  %614 = vmatmul.f32.gmra.mxu1 %v363_v28 }
 0x175   : > { %v570_v60 = vpop.f32.mrf.mxu1 }
 0x176   : > { %v571_v31 = vadd.f32 %v570_v60, %v2163_v1  ;;  %v469_v1 = vpop.f32.mrf.mxu2 }
 0x177   : > { %v672_v33 = vld [vmem:[#allocation2 + $0x50] ss:$2 sm:$0xff]  ;;  %v704_v34 = vld [vmem:[#allocation2 + $0x51] ss:$2 sm:$0xff] }
 0x178   : > { %v730_v35 = vadd.f32 %v704_v34, %v672_v33  ;;  %642 = vst [vmem:[#allocation2 + $0x60] sm:$0xff] %v571_v31  ;;  %617 = vmatmul.f32.gmra.mxu1 %v365_v30  ;;  %v496_v31 = vpop.f32.mrf.mxu3 }
 0x17a   : > { %v2235_v36 = vmul.f32 0.5, %v730_v35 }
 0x17c   : > { %762 = vst [vmem:[%s2190_s6 + $0x28] sm:$0xff] %v2235_v36 }
 0x17d   : > { %v573_v37 = vpop.f32.mrf.mxu1 }
 0x17e   : > { %v574_v62 = vadd.f32 %v573_v37, %v2167_v4  ;;  %v472_v49 = vpop.f32.mrf.mxu2 }
 0x180   : > { %643 = vst [vmem:[#allocation2 + $0x68] sm:$0xff] %v574_v62  ;;  %620 = vmatmul.f32.gmra.mxu1 %v367_v38  ;;  %v499_v62 = vpop.f32.mrf.mxu3 }
 0x185   : > { %v576_v39 = vpop.f32.mrf.mxu1 }
 0x186   : > { %v577_v41 = vadd.f32 %v576_v39, %v2171_v7  ;;  %v475_v54 = vpop.f32.mrf.mxu2 }
 0x187   : > { %v674_v42 = vld [vmem:[#allocation2 + $0x60] ss:$2 sm:$0xff]  ;;  %v706_v43 = vld [vmem:[#allocation2 + $0x61] ss:$2 sm:$0xff] }
 0x188   : > { %v731_v44 = vadd.f32 %v706_v43, %v674_v42  ;;  %644 = vst [vmem:[#allocation2 + $0x70] sm:$0xff] %v577_v41  ;;  %623 = vmatmul.f32.gmra.mxu1 %v369_v40  ;;  %v502_v41 = vpop.f32.mrf.mxu3 }
 0x18a   : > { %v2243_v45 = vmul.f32 0.5, %v731_v44 }
 0x18c   : > { %763 = vst [vmem:[%s2190_s6 + $0x30] sm:$0xff] %v2243_v45 }
 0x18d   : > { %v579_v47 = vpop.f32.mrf.mxu1 }
 0x18e   : > { %v580_v4 = vadd.f32 %v579_v47, %v2175_v11  ;;  %v478_v61 = vpop.f32.mrf.mxu2 }
 0x190   : > { %645 = vst [vmem:[#allocation2 + $0x78] sm:$0xff] %v580_v4  ;;  %626 = vmatmul.f32.gmra.mxu1 %v371_v48 }
 0x195   : > { %v582_v50 = vpop.f32.mrf.mxu1 }
 0x196   : > { %v583_v51 = vadd.f32 %v582_v50, %v469_v1  ;;  %v481_v9 = vpop.f32.mrf.mxu2  ;;  %v505_v50 = vpop.f32.mrf.mxu3 }
 0x197   : > { %v676_v7 = vld [vmem:[#allocation2 + $0x70] ss:$2 sm:$0xff]  ;;  %v708_v52 = vld [vmem:[#allocation2 + $0x71] ss:$2 sm:$0xff] }
 0x198   : > { %v732_v53 = vadd.f32 %v708_v52, %v676_v7  ;;  %646 = vst [vmem:[#allocation2 + $0x80] sm:$0xff] %v583_v51 }
 0x19a   : > { %v2249_v55 = vmul.f32 0.5, %v732_v53 }
 0x19c   : > { %764 = vst [vmem:[%s2190_s6 + $0x38] sm:$0xff] %v2249_v55 }
 0x19d   : > { %v585_v57 = vpop.f32.mrf.mxu1 }
 0x19e   : > { %v586_v59 = vadd.f32 %v585_v57, %v472_v49  ;;  %v484_v17 = vpop.f32.mrf.mxu2  ;;  %v508_v57 = vpop.f32.mrf.mxu3 }
 0x1a0   : > { %647 = vst [vmem:[#allocation2 + $0x88] sm:$0xff] %v586_v59 }
 0x1a5   : > { %v588_v11 = vpop.f32.mrf.mxu1 }
 0x1a6   : > { %v589_v0 = vadd.f32 %v588_v11, %v475_v54  ;;  %v487_v21 = vpop.f32.mrf.mxu2 }
 0x1a7   : > { %v678_v2 = vld [vmem:[#allocation2 + $0x80] ss:$2 sm:$0xff]  ;;  %v710_v3 = vld [vmem:[#allocation2 + $0x81] ss:$2 sm:$0xff] }
 0x1a8   : > { %v733_v5 = vadd.f32 %v710_v3, %v678_v2  ;;  %648 = vst [vmem:[#allocation2 + $0x90] sm:$0xff] %v589_v0 }
 0x1aa   : > { %v2253_v6 = vmul.f32 0.5, %v733_v5 }
 0x1ac   : > { %765 = vst [vmem:[%s2190_s6 + $0x40] sm:$0xff] %v2253_v6 }
 0x1ad   : > { %v591_v8 = vpop.f32.mrf.mxu1 }
 0x1ae   : > { %v592_v10 = vadd.f32 %v591_v8, %v478_v61  ;;  %v490_v29 = vpop.f32.mrf.mxu2 }
 0x1b0   : > { %649 = vst [vmem:[#allocation2 + $0x98] sm:$0xff] %v592_v10 }
 0x1b5   : > { %v594_v12 = vpop.f32.mrf.mxu1 }
 0x1b6   : > { %v595_v13 = vadd.f32 %v594_v12, %v481_v9 }
 0x1b7   : > { %v680_v14 = vld [vmem:[#allocation2 + $0x90] ss:$2 sm:$0xff]  ;;  %v712_v15 = vld [vmem:[#allocation2 + $0x91] ss:$2 sm:$0xff] }
 0x1b8   : > { %v734_v18 = vadd.f32 %v712_v15, %v680_v14  ;;  %650 = vst [vmem:[#allocation2 + $0xa0] sm:$0xff] %v595_v13 }
 0x1ba   : > { %v2257_v19 = vmul.f32 0.5, %v734_v18 }
 0x1bc   : > { %766 = vst [vmem:[%s2190_s6 + $0x48] sm:$0xff] %v2257_v19 }
 0x1bd   : > { %v597_v56 = vpop.f32.mrf.mxu1 }
 0x1be   : > { %v598_v20 = vadd.f32 %v597_v56, %v484_v17 }
 0x1c0   : > { %651 = vst [vmem:[#allocation2 + $0xa8] sm:$0xff] %v598_v20 }
 0x1c5   : > { %v600_v22 = vpop.f32.mrf.mxu1 }
 0x1c6   : > { %v601_v24 = vadd.f32 %v600_v22, %v487_v21  ;;  %v773_v21 = vld [vmem:[#allocation4] sm:$0xff]  ;;  %v1024_v22 = vld [vmem:[#allocation9 + $0xd0] sm:$0xff] }
 0x1c7   : > { %v682_v25 = vld [vmem:[#allocation2 + $0xa0] ss:$2 sm:$0xff]  ;;  %v714_v26 = vld [vmem:[#allocation2 + $0xa1] ss:$2 sm:$0xff] }
 0x1c8   : > { %v735_v58 = vadd.f32 %v714_v26, %v682_v25  ;;  %652 = vst [vmem:[#allocation2 + $0xb0] sm:$0xff] %v601_v24  ;;  %v1025_v24 = vld [vmem:[#allocation9 + $0xd8] sm:$0xff]  ;;  %v1020_v25 = vld [vmem:[#allocation9 + $0xb0] sm:$0xff]  ;;  %v1023_v26 = vld [vmem:[#allocation9 + $0xc8] sm:$0xff] }
 0x1ca   : > { %v2261_v28 = vmul.f32 0.5, %v735_v58  ;;  %v780_v58 = vld [vmem:[#allocation4 + $0x38] sm:$0xff] }
 0x1cc   : > { %767 = vst [vmem:[%s2190_s6 + $0x50] sm:$0xff] %v2261_v28 }
 0x1cd   : > { %v603_v60 = vpop.f32.mrf.mxu1 }
 0x1ce   : > { %v604_v30 = vadd.f32 %v603_v60, %v490_v29  ;;  %v1021_v29 = vld [vmem:[#allocation9 + $0xb8] sm:$0xff]  ;;  %v1016_v60 = vld [vmem:[#allocation9 + $0x90] sm:$0xff] }
 0x1d0   : > { %653 = vst [vmem:[#allocation2 + $0xb8] sm:$0xff] %v604_v30  ;;  %v1019_v30 = vld [vmem:[#allocation9 + $0xa8] sm:$0xff] }
 0x1d5   : > { %v606_v33 = vpop.f32.mrf.mxu1 }
 0x1d6   : > { %v607_v34 = vadd.f32 %v606_v33, %v493_v23  ;;  %v1022_v23 = vld [vmem:[#allocation9 + $0xc0] sm:$0xff] }
 0x1d7   : > { %v684_v35 = vld [vmem:[#allocation2 + $0xb0] ss:$2 sm:$0xff]  ;;  %v716_v37 = vld [vmem:[#allocation2 + $0xb1] ss:$2 sm:$0xff]  ;;  %v1014_v33 = vld [vmem:[#allocation9 + $0x80] sm:$0xff] }
 0x1d8   : > { %v736_v38 = vadd.f32 %v716_v37, %v684_v35  ;;  %654 = vst [vmem:[#allocation2 + $0xc0] sm:$0xff] %v607_v34  ;;  %v1017_v34 = vld [vmem:[#allocation9 + $0x98] sm:$0xff]  ;;  %v1012_v35 = vld [vmem:[#allocation9 + $0x70] sm:$0xff]  ;;  %v1015_v37 = vld [vmem:[#allocation9 + $0x88] sm:$0xff] }
 0x1da   : > { %v752_v39 = vmul.f32 0.5, %v736_v38  ;;  %v511_v2 = vpop.f32.mrf.mxu3  ;;  %v782_v38 = vld [vmem:[#allocation4 + $0x48] sm:$0xff] }
 0x1dc   : > { %768 = vst [vmem:[%s2190_s6 + $0x58] sm:$0xff] %v752_v39 }
 0x1dd   : > { %v609_v40 = vpop.f32.mrf.mxu1 }
 0x1de   : > { %v610_v1 = vadd.f32 %v609_v40, %v496_v31  ;;  %v781_v31 = vld [vmem:[#allocation4 + $0x40] sm:$0xff]  ;;  %v1008_v40 = vld [vmem:[#allocation9 + $0x50] sm:$0xff] }
 0x1e0   : > { %655 = vst [vmem:[#allocation2 + $0xc8] sm:$0xff] %v610_v1  ;;  %v1011_v1 = vld [vmem:[#allocation9 + $0x68] sm:$0xff] }
 0x1e2   : > { %v514_v13 = vpop.f32.mrf.mxu3 }
 0x1e5   : > { %v612_v42 = vpop.f32.mrf.mxu1 }
 0x1e6   : > { %v613_v43 = vadd.f32 %v612_v42, %v499_v62  ;;  %v1010_v62 = vld [vmem:[#allocation9 + $0x60] sm:$0xff] }
 0x1e7   : > { %v686_v44 = vld [vmem:[#allocation2 + $0xc0] ss:$2 sm:$0xff]  ;;  %v718_v47 = vld [vmem:[#allocation2 + $0xc1] ss:$2 sm:$0xff] }
 0x1e8   : > { %v737_v48 = vadd.f32 %v718_v47, %v686_v44  ;;  %656 = vst [vmem:[#allocation2 + $0xd0] sm:$0xff] %v613_v43  ;;  %v1006_v42 = vld [vmem:[#allocation9 + $0x40] sm:$0xff]  ;;  %v1009_v43 = vld [vmem:[#allocation9 + $0x58] sm:$0xff]  ;;  %v1004_v44 = vld [vmem:[#allocation9 + $0x30] sm:$0xff] }
 0x1e9   : > { %v1007_v47 = vld [vmem:[#allocation9 + $0x48] sm:$0xff] }
 0x1ea   : > { %v753_v4 = vmul.f32 0.5, %v737_v48  ;;  %v784_v48 = vld [vmem:[#allocation4 + $0x58] sm:$0xff] }
 0x1ec   : > { %769 = vst [vmem:[%s2190_s6 + $0x60] sm:$0xff] %v753_v4 }
 0x1ed   : > { %v615_v49 = vpop.f32.mrf.mxu1 }
 0x1ee   : > { %v616_v51 = vadd.f32 %v615_v49, %v502_v41  ;;  %v783_v41 = vld [vmem:[#allocation4 + $0x50] sm:$0xff]  ;;  %v1005_v49 = vld [vmem:[#allocation9 + $0x38] sm:$0xff] }
 0x1f0   : > { %657 = vst [vmem:[#allocation2 + $0xd8] sm:$0xff] %v616_v51  ;;  %v1003_v51 = vld [vmem:[#allocation9 + $0x28] sm:$0xff] }
 0x1f5   : > { %v618_v7 = vpop.f32.mrf.mxu1 }
 0x1f6   : > { %v619_v52 = vadd.f32 %v618_v7, %v505_v50  ;;  %v1000_v50 = vld [vmem:[#allocation9 + $0x10] sm:$0xff]  ;;  %v785_v7 = vld [vmem:[#allocation4 + $0x60] sm:$0xff] }
 0x1f7   : > { %v688_v53 = vld [vmem:[#allocation2 + $0xd0] ss:$2 sm:$0xff]  ;;  %v720_v54 = vld [vmem:[#allocation2 + $0xd1] ss:$2 sm:$0xff] }
 0x1f8   : > { %v738_v59 = vadd.f32 %v720_v54, %v688_v53  ;;  %658 = vst [vmem:[#allocation2 + $0xe0] sm:$0xff] %v619_v52  ;;  %v998_v52 = vld [vmem:[#allocation9] sm:$0xff]  ;;  %v1001_v53 = vld [vmem:[#allocation9 + $0x18] sm:$0xff]  ;;  %v999_v54 = vld [vmem:[#allocation9 + $0x8] sm:$0xff] }
 0x1fa   : > { %v754_v61 = vmul.f32 0.5, %v738_v59  ;;  %v787_v59 = vld [vmem:[#allocation4 + $0x70] sm:$0xff] }
 0x1fc   : > { %770 = vst [vmem:[%s2190_s6 + $0x68] sm:$0xff] %v754_v61 }
 0x1fd   : > { %v621_v11 = vpop.f32.mrf.mxu1 }
 0x1fe   : > { %v622_v0 = vadd.f32 %v621_v11, %v508_v57  ;;  %v786_v57 = vld [vmem:[#allocation4 + $0x68] sm:$0xff]  ;;  %v789_v11 = vld [vmem:[#allocation4 + $0x80] sm:$0xff] }
 0x200   : > { %659 = vst [vmem:[#allocation2 + $0xe8] sm:$0xff] %v622_v0 }
 0x205   : > { %v624_v3 = vpop.f32.mrf.mxu1 }
 0x206   : > { %v625_v5 = vadd.f32 %v624_v3, %v511_v2  ;;  %v790_v2 = vld [vmem:[#allocation4 + $0x88] sm:$0xff] }
 0x207   : > { %v690_v8 = vld [vmem:[#allocation2 + $0xe0] ss:$2 sm:$0xff]  ;;  %v722_v9 = vld [vmem:[#allocation2 + $0xe1] ss:$2 sm:$0xff] }
 0x208   : > { %v739_v10 = vadd.f32 %v722_v9, %v690_v8  ;;  %660 = vst [vmem:[#allocation2 + $0xf0] sm:$0xff] %v625_v5  ;;  %v791_v5 = vld [vmem:[#allocation4 + $0x90] sm:$0xff]  ;;  %v792_v9 = vld [vmem:[#allocation4 + $0x98] sm:$0xff] }
 0x20a   : > { %v755_v12 = vmul.f32 0.5, %v739_v10 }
 0x20c   : > { %771 = vst [vmem:[%s2190_s6 + $0x70] sm:$0xff] %v755_v12 }
 0x20d   : > { %v627_v14 = vpop.f32.mrf.mxu1 }
 0x20e   : > { %v628_v15 = vadd.f32 %v627_v14, %v514_v13  ;;  %v794_v14 = vld [vmem:[#allocation4 + $0xa8] sm:$0xff] }
 0x210   : > { %661 = vst [vmem:[#allocation2 + $0xf8] sm:$0xff] %v628_v15 }
 0x217   : > { %v692_v17 = vld [vmem:[#allocation2 + $0xf0] ss:$2 sm:$0xff]  ;;  %v724_v18 = vld [vmem:[#allocation2 + $0xf1] ss:$2 sm:$0xff] }
 0x218   : > { %v740_v56 = vadd.f32 %v724_v18, %v692_v17  ;;  %v795_v17 = vld [vmem:[#allocation4 + $0xb0] sm:$0xff] }
 0x21a   : > { %v756_v20 = vmul.f32 0.5, %v740_v56  ;;  %v796_v56 = vld [vmem:[#allocation4 + $0xb8] sm:$0xff] }
 0x21c   : > { %772 = vst [vmem:[%s2190_s6 + $0x78] sm:$0xff] %v756_v20  ;;  %821 = vmatpush.msrb.mxu2 %v756_v20 }
 0x21e   : > { %822 = vmatpush.msrb.mxu2 %v755_v12  ;;  %v793_v12 = vld [vmem:[#allocation4 + $0xa0] sm:$0xff] }
 0x220   : > { %823 = vmatpush.msrb.mxu2 %v754_v61  ;;  %v788_v61 = vld [vmem:[#allocation4 + $0x78] sm:$0xff] }
 0x222   : > { %824 = vmatpush.msrb.mxu2 %v753_v4  ;;  %v1002_v4 = vld [vmem:[#allocation9 + $0x20] sm:$0xff] }
 0x224   : > { %825 = vmatpush.msrb.mxu2 %v752_v39  ;;  %v1013_v39 = vld [vmem:[#allocation9 + $0x78] sm:$0xff] }
 0x226   : > { %826 = vmatpush.msrb.mxu2 %v2261_v28  ;;  %v1018_v28 = vld [vmem:[#allocation9 + $0xa0] sm:$0xff] }
 0x228   : > { %827 = vmatpush.msrb.mxu2 %v2257_v19  ;;  %v774_v19 = vld [vmem:[#allocation4 + $0x8] sm:$0xff] }
 0x22a   : > { %828 = vmatpush.msrb.mxu2 %v2253_v6  ;;  %v775_v6 = vld [vmem:[#allocation4 + $0x10] sm:$0xff] }
 0x22c   : > { %829 = vmatpush.msrb.mxu2 %v2249_v55  ;;  %v776_v55 = vld [vmem:[#allocation4 + $0x18] sm:$0xff] }
 0x22e   : > { %830 = vmatpush.msrb.mxu2 %v2243_v45  ;;  %v777_v45 = vld [vmem:[#allocation4 + $0x20] sm:$0xff] }
 0x230   : > { %831 = vmatpush.msrb.mxu2 %v2235_v36  ;;  %v1028_v36 = vld [vmem:[#allocation9 + $0xf0] sm:$0xff] }
 0x231   : > { %1030 = vmatpush.msrb.mxu3 %v1028_v36 }
 0x232   : > { %832 = vmatpush.msrb.mxu2 %v2227_v27  ;;  %v778_v27 = vld [vmem:[#allocation4 + $0x28] sm:$0xff] }
 0x234   : > { %833 = vmatpush.msrb.mxu2 %v2217_v16  ;;  %v1026_v16 = vld [vmem:[#allocation9 + $0xe0] sm:$0xff] }
 0x235   : > { %1031 = vmatpush.msrb.mxu3 %v1026_v16 }
 0x236   : > { %834 = vmatpush.msrb.mxu2 %v2208_v63  ;;  %v1029_v63 = vld [vmem:[#allocation9 + $0xf8] sm:$0xff] }
 0x237   : > { %1143 = vmatpush.msrb.mxu0 %v1029_v63  ;;  %1032 = vmatpush.msrb.mxu3 %v1024_v22  ;;  %v801_v63 = vld [vmem:[#allocation4 + $0xe0] sm:$0xff] }
 0x238   : > { %835 = vmatpush.msrb.mxu2 %v2200_v46  ;;  %v1027_v46 = vld [vmem:[#allocation9 + $0xe8] sm:$0xff] }
 0x239   : > { %1144 = vmatpush.msrb.mxu0 %v1027_v46  ;;  %1033 = vmatpush.msrb.mxu3 %v1022_v23  ;;  %v802_v46 = vld [vmem:[#allocation4 + $0xe8] sm:$0xff]  ;;  %v803_v23 = vld [vmem:[#allocation4 + $0xf0] sm:$0xff] }
 0x23a   : > { %836 = vmatpush.msrb.mxu2 %v2192_v32  ;;  %v779_v32 = vld [vmem:[#allocation4 + $0x30] sm:$0xff] }
 0x23b   : > { %837 = vmatmul.f32.vlgmr.msrb.gmra.mxu2 %v773_v21  ;;  %1145 = vmatpush.msrb.mxu0 %v1025_v24  ;;  %v797_v21 = vld [vmem:[#allocation4 + $0xc0] sm:$0xff] }
 0x23c   : > { %1034 = vmatpush.msrb.mxu3 %v1020_v25  ;;  %v804_v25 = vld [vmem:[#allocation4 + $0xf8] sm:$0xff] }
 0x23d   : > { %1146 = vmatpush.msrb.mxu0 %v1023_v26 }
 0x23e   : > { %1035 = vmatpush.msrb.mxu3 %v1018_v28 }
 0x23f   : > { %1147 = vmatpush.msrb.mxu0 %v1021_v29 }
 0x240   : > { %1036 = vmatpush.msrb.mxu3 %v1016_v60 }
 0x241   : > { %1148 = vmatpush.msrb.mxu0 %v1019_v30  ;;  %v1256_v30 = vld [vmem:[%s2120_s16] sm:$0xff] }
 0x242   : > { %1037 = vmatpush.msrb.mxu3 %v1014_v33  ;;  %v1259_v33 = vld [vmem:[%s2120_s16 + $0x18] sm:$0xff] }
 0x243   : > { %840 = vmatmul.f32.gmra.mxu2 %v774_v19  ;;  %1149 = vmatpush.msrb.mxu0 %v1017_v34 }
 0x244   : > { %1038 = vmatpush.msrb.mxu3 %v1012_v35 }
 0x245   : > { %1150 = vmatpush.msrb.mxu0 %v1015_v37 }
 0x246   : > { %1039 = vmatpush.msrb.mxu3 %v1010_v62  ;;  %v1258_v62 = vld [vmem:[%s2120_s16 + $0x10] sm:$0xff] }
 0x247   : > { %1151 = vmatpush.msrb.mxu0 %v1013_v39 }
 0x248   : > { %1040 = vmatpush.msrb.mxu3 %v1008_v40  ;;  %v1261_v40 = vld [vmem:[%s2120_s16 + $0x28] sm:$0xff] }
 0x249   : > { %1152 = vmatpush.msrb.mxu0 %v1011_v1 }
 0x24a   : > { %1041 = vmatpush.msrb.mxu3 %v1006_v42 }
 0x24b   : > { %843 = vmatmul.f32.gmra.mxu2 %v775_v6  ;;  %1153 = vmatpush.msrb.mxu0 %v1009_v43  ;;  %v798_v6 = vld [vmem:[#allocation4 + $0xc8] sm:$0xff] }
 0x24c   : > { %1042 = vmatpush.msrb.mxu3 %v1004_v44  ;;  %v1260_v44 = vld [vmem:[%s2120_s16 + $0x20] sm:$0xff] }
 0x24d   : > { %1154 = vmatpush.msrb.mxu0 %v1007_v47 }
 0x24e   : > { %1043 = vmatpush.msrb.mxu3 %v1002_v4 }
 0x24f   : > { %1155 = vmatpush.msrb.mxu0 %v1005_v49 }
 0x250   : > { %1044 = vmatpush.msrb.mxu3 %v1000_v50 }
 0x251   : > { %1156 = vmatpush.msrb.mxu0 %v1003_v51 }
 0x252   : > { %1045 = vmatpush.msrb.mxu3 %v998_v52 }
 0x253   : > { %846 = vmatmul.f32.gmra.mxu2 %v776_v55  ;;  %1157 = vmatpush.msrb.mxu0 %v1001_v53  ;;  %v1265_v53 = vld [vmem:[%s2120_s16 + $0x48] sm:$0xff] }
 0x255   : > { %1158 = vmatpush.msrb.mxu0 %v999_v54 }
 0x25b   : > { %849 = vmatmul.f32.gmra.mxu2 %v777_v45  ;;  %v799_v45 = vld [vmem:[#allocation4 + $0xd0] sm:$0xff] }
 0x263   : > { %852 = vmatmul.f32.gmra.mxu2 %v778_v27  ;;  %v800_v27 = vld [vmem:[#allocation4 + $0xd8] sm:$0xff] }
 0x26b   : > { %855 = vmatmul.f32.gmra.mxu2 %v779_v32 }
 0x273   : > { %858 = vmatmul.f32.gmra.mxu2 %v780_v58  ;;  %v1257_v58 = vld [vmem:[%s2120_s16 + $0x8] sm:$0xff] }
 0x27b   : > { %861 = vmatmul.f32.gmra.mxu2 %v781_v31 }
 0x283   : > { %864 = vmatmul.f32.gmra.mxu2 %v782_v38 }
 0x28b   : > { %867 = vmatmul.f32.gmra.mxu2 %v783_v41 }
 0x293   : > { %870 = vmatmul.f32.gmra.mxu2 %v784_v48  ;;  %v1263_v48 = vld [vmem:[%s2120_s16 + $0x38] sm:$0xff] }
 0x29b   : > { %873 = vmatmul.f32.gmra.mxu2 %v785_v7  ;;  %v1262_v7 = vld [vmem:[%s2120_s16 + $0x30] sm:$0xff] }
 0x2a3   : > { %876 = vmatmul.f32.gmra.mxu2 %v786_v57 }
 0x2ab   : > { %879 = vmatmul.f32.gmra.mxu2 %v787_v59 }
 0x2b3   : > { %882 = vmatmul.f32.gmra.mxu2 %v788_v61 }
 0x2bb   : > { %885 = vmatmul.f32.gmra.mxu2 %v789_v11  ;;  %v1264_v11 = vld [vmem:[%s2120_s16 + $0x40] sm:$0xff] }
 0x2be   : > { %v838_v0 = vpop.f32.mrf.mxu2 }
 0x2bf   : > { %1046 = vmatmul.f32.vlgmr.msrb.gmra.mxu3 %v838_v0  ;;  %1159 = vmatmul.f32.vlgmr.msrb.gmra.mxu0 %v838_v0 }
 0x2c3   : > { %888 = vmatmul.f32.gmra.mxu2 %v790_v2  ;;  %v1267_v2 = vld [vmem:[%s2120_s16 + $0x58] sm:$0xff] }
 0x2c6   : > { %v841_v3 = vpop.f32.mrf.mxu2 }
 0x2c7   : > { %1049 = vmatmul.f32.gmra.mxu3 %v841_v3  ;;  %1162 = vmatmul.f32.gmra.mxu0 %v841_v3 }
 0x2cb   : > { %891 = vmatmul.f32.gmra.mxu2 %v791_v5 }
 0x2ce   : > { %v844_v8 = vpop.f32.mrf.mxu2 }
 0x2cf   : > { %1052 = vmatmul.f32.gmra.mxu3 %v844_v8  ;;  %1165 = vmatmul.f32.gmra.mxu0 %v844_v8 }
 0x2d3   : > { %894 = vmatmul.f32.gmra.mxu2 %v792_v9 }
 0x2d6   : > { %v847_v10 = vpop.f32.mrf.mxu2 }
 0x2d7   : > { %1055 = vmatmul.f32.gmra.mxu3 %v847_v10  ;;  %1168 = vmatmul.f32.gmra.mxu0 %v847_v10  ;;  %v1266_v10 = vld [vmem:[%s2120_s16 + $0x50] sm:$0xff] }
 0x2db   : > { %897 = vmatmul.f32.gmra.mxu2 %v793_v12 }
 0x2de   : > { %v850_v13 = vpop.f32.mrf.mxu2 }
 0x2df   : > { %1058 = vmatmul.f32.gmra.mxu3 %v850_v13  ;;  %1171 = vmatmul.f32.gmra.mxu0 %v850_v13  ;;  %v1269_v13 = vld [vmem:[%s2120_s16 + $0x68] sm:$0xff] }
 0x2e3   : > { %900 = vmatmul.f32.gmra.mxu2 %v794_v14 }
 0x2e6   : > { %v853_v15 = vpop.f32.mrf.mxu2 }
 0x2e7   : > { %1061 = vmatmul.f32.gmra.mxu3 %v853_v15  ;;  %1174 = vmatmul.f32.gmra.mxu0 %v853_v15 }
 0x2eb   : > { %903 = vmatmul.f32.gmra.mxu2 %v795_v17 }
 0x2ee   : > { %v856_v18 = vpop.f32.mrf.mxu2 }
 0x2ef   : > { %1064 = vmatmul.f32.gmra.mxu3 %v856_v18  ;;  %1177 = vmatmul.f32.gmra.mxu0 %v856_v18 }
 0x2f3   : > { %906 = vmatmul.f32.gmra.mxu2 %v796_v56  ;;  %v1268_v56 = vld [vmem:[%s2120_s16 + $0x60] sm:$0xff] }
 0x2f6   : > { %v859_v20 = vpop.f32.mrf.mxu2 }
 0x2f7   : > { %1067 = vmatmul.f32.gmra.mxu3 %v859_v20  ;;  %1180 = vmatmul.f32.gmra.mxu0 %v859_v20 }
 0x2fb   : > { %909 = vmatmul.f32.gmra.mxu2 %v797_v21  ;;  %v1271_v21 = vld [vmem:[%s2120_s16 + $0x78] sm:$0xff] }
 0x2fe   : > { %v862_v19 = vpop.f32.mrf.mxu2 }
 0x2ff   : > { %1070 = vmatmul.f32.gmra.mxu3 %v862_v19  ;;  %1183 = vmatmul.f32.gmra.mxu0 %v862_v19 }
 0x303   : > { %912 = vmatmul.f32.gmra.mxu2 %v798_v6 }
 0x306   : > { %v865_v55 = vpop.f32.mrf.mxu2 }
 0x307   : > { %1073 = vmatmul.f32.gmra.mxu3 %v865_v55  ;;  %1186 = vmatmul.f32.gmra.mxu0 %v865_v55 }
 0x30b   : > { %915 = vmatmul.f32.gmra.mxu2 %v799_v45 }
 0x30e   : > { %v868_v36 = vpop.f32.mrf.mxu2 }
 0x30f   : > { %1076 = vmatmul.f32.gmra.mxu3 %v868_v36  ;;  %1189 = vmatmul.f32.gmra.mxu0 %v868_v36  ;;  %v1270_v36 = vld [vmem:[%s2120_s16 + $0x70] sm:$0xff] }
 0x313   : > { %918 = vmatmul.f32.gmra.mxu2 %v800_v27 }
 0x316   : > { %v871_v16 = vpop.f32.mrf.mxu2 }
 0x317   : > { %1079 = vmatmul.f32.gmra.mxu3 %v871_v16  ;;  %1192 = vmatmul.f32.gmra.mxu0 %v871_v16  ;;  %v1273_v16 = vld [vmem:[%s2120_s16 + $0x88] sm:$0xff] }
 0x31b   : > { %921 = vmatmul.f32.gmra.mxu2 %v801_v63 }
 0x31e   : > { %v874_v22 = vpop.f32.mrf.mxu2 }
 0x31f   : > { %1082 = vmatmul.f32.gmra.mxu3 %v874_v22  ;;  %1195 = vmatmul.f32.gmra.mxu0 %v874_v22 }
 0x323   : > { %924 = vmatmul.f32.gmra.mxu2 %v802_v46 }
 0x326   : > { %v877_v32 = vpop.f32.mrf.mxu2 }
 0x327   : > { %1085 = vmatmul.f32.gmra.mxu3 %v877_v32  ;;  %1198 = vmatmul.f32.gmra.mxu0 %v877_v32 }
 0x32b   : > { %927 = vmatmul.f32.gmra.mxu2 %v803_v23  ;;  %v1272_v23 = vld [vmem:[%s2120_s16 + $0x80] sm:$0xff] }
 0x32e   : > { %v880_v24 = vpop.f32.mrf.mxu2 }
 0x32f   : > { %1088 = vmatmul.f32.gmra.mxu3 %v880_v24  ;;  %1201 = vmatmul.f32.gmra.mxu0 %v880_v24 }
 0x333   : > { %930 = vmatmul.f32.gmra.mxu2 %v804_v25  ;;  %v1275_v25 = vld [vmem:[%s2120_s16 + $0x98] sm:$0xff] }
 0x336   : > { %v883_v26 = vpop.f32.mrf.mxu2 }
 0x337   : > { %1091 = vmatmul.f32.gmra.mxu3 %v883_v26  ;;  %1204 = vmatmul.f32.gmra.mxu0 %v883_v26 }
 0x33c   : > { %v1160_v28 = vpop.f32.mrf.mxu0 }
 0x33d   : > { %v1321_v29 = vsub.f32 %v1257_v58, %v1160_v28 }
 0x33e   : > { %v886_v60 = vpop.f32.mrf.mxu2 }
 0x33f   : > { %1385 = vst [vmem:[%s2284_s8 + $0x8] sm:$0xff] %v1321_v29  ;;  %1094 = vmatmul.f32.gmra.mxu3 %v886_v60  ;;  %1207 = vmatmul.f32.gmra.mxu0 %v886_v60  ;;  %v1274_v60 = vld [vmem:[%s2120_s16 + $0x90] sm:$0xff] }
 0x342   : > { %v1047_v31 = vpop.f32.mrf.mxu3 }
 0x343   : > { %v1320_v34 = vsub.f32 %v1256_v30, %v1047_v31  ;;  %v1277_v31 = vld [vmem:[%s2120_s16 + $0xa8] sm:$0xff] }
 0x344   : > { %v1163_v35 = vpop.f32.mrf.mxu0 }
 0x345   : > { %1384 = vst [vmem:[%s2284_s8] sm:$0xff] %v1320_v34  ;;  %v1323_v37 = vsub.f32 %v1259_v33, %v1163_v35 }
 0x346   : > { %v889_v38 = vpop.f32.mrf.mxu2 }
 0x347   : > { %1387 = vst [vmem:[%s2284_s8 + $0x18] sm:$0xff] %v1323_v37  ;;  %1097 = vmatmul.f32.gmra.mxu3 %v889_v38  ;;  %1210 = vmatmul.f32.gmra.mxu0 %v889_v38  ;;  %v1276_v38 = vld [vmem:[%s2120_s16 + $0xa0] sm:$0xff] }
 0x34a   : > { %v1050_v39 = vpop.f32.mrf.mxu3 }
 0x34b   : > { %v1322_v1 = vsub.f32 %v1258_v62, %v1050_v39  ;;  %v1279_v39 = vld [vmem:[%s2120_s16 + $0xb8] sm:$0xff] }
 0x34c   : > { %v1166_v41 = vpop.f32.mrf.mxu0 }
 0x34d   : > { %1386 = vst [vmem:[%s2284_s8 + $0x10] sm:$0xff] %v1322_v1  ;;  %v1325_v42 = vsub.f32 %v1261_v40, %v1166_v41 }
 0x34e   : > { %v892_v43 = vpop.f32.mrf.mxu2 }
 0x34f   : > { %1389 = vst [vmem:[%s2284_s8 + $0x28] sm:$0xff] %v1325_v42  ;;  %1100 = vmatmul.f32.gmra.mxu3 %v892_v43  ;;  %1213 = vmatmul.f32.gmra.mxu0 %v892_v43  ;;  %v1278_v43 = vld [vmem:[%s2120_s16 + $0xb0] sm:$0xff] }
 0x352   : > { %v1053_v47 = vpop.f32.mrf.mxu3 }
 0x353   : > { %v1324_v4 = vsub.f32 %v1260_v44, %v1053_v47  ;;  %v1281_v47 = vld [vmem:[%s2120_s16 + $0xc8] sm:$0xff] }
 0x354   : > { %v1169_v49 = vpop.f32.mrf.mxu0 }
 0x355   : > { %1388 = vst [vmem:[%s2284_s8 + $0x20] sm:$0xff] %v1324_v4  ;;  %v1327_v50 = vsub.f32 %v1263_v48, %v1169_v49 }
 0x356   : > { %v895_v51 = vpop.f32.mrf.mxu2 }
 0x357   : > { %1391 = vst [vmem:[%s2284_s8 + $0x38] sm:$0xff] %v1327_v50  ;;  %1103 = vmatmul.f32.gmra.mxu3 %v895_v51  ;;  %1216 = vmatmul.f32.gmra.mxu0 %v895_v51  ;;  %v1280_v51 = vld [vmem:[%s2120_s16 + $0xc0] sm:$0xff] }
 0x35a   : > { %v1056_v52 = vpop.f32.mrf.mxu3 }
 0x35b   : > { %v1326_v54 = vsub.f32 %v1262_v7, %v1056_v52  ;;  %v1283_v52 = vld [vmem:[%s2120_s16 + $0xd8] sm:$0xff] }
 0x35c   : > { %v1172_v57 = vpop.f32.mrf.mxu0 }
 0x35d   : > { %1390 = vst [vmem:[%s2284_s8 + $0x30] sm:$0xff] %v1326_v54  ;;  %v1329_v59 = vsub.f32 %v1265_v53, %v1172_v57 }
 0x35e   : > { %v898_v61 = vpop.f32.mrf.mxu2 }
 0x35f   : > { %1393 = vst [vmem:[%s2284_s8 + $0x48] sm:$0xff] %v1329_v59  ;;  %1106 = vmatmul.f32.gmra.mxu3 %v898_v61  ;;  %1219 = vmatmul.f32.gmra.mxu0 %v898_v61  ;;  %v1282_v61 = vld [vmem:[%s2120_s16 + $0xd0] sm:$0xff] }
 0x362   : > { %v1059_v0 = vpop.f32.mrf.mxu3 }
 0x363   : > { %v1328_v3 = vsub.f32 %v1264_v11, %v1059_v0  ;;  %v1285_v0 = vld [vmem:[%s2120_s16 + $0xe8] sm:$0xff] }
 0x364   : > { %v1175_v5 = vpop.f32.mrf.mxu0 }
 0x365   : > { %1392 = vst [vmem:[%s2284_s8 + $0x40] sm:$0xff] %v1328_v3  ;;  %v1331_v8 = vsub.f32 %v1267_v2, %v1175_v5 }
 0x366   : > { %v901_v9 = vpop.f32.mrf.mxu2 }
 0x367   : > { %1395 = vst [vmem:[%s2284_s8 + $0x58] sm:$0xff] %v1331_v8  ;;  %1109 = vmatmul.f32.gmra.mxu3 %v901_v9  ;;  %1222 = vmatmul.f32.gmra.mxu0 %v901_v9  ;;  %v1284_v9 = vld [vmem:[%s2120_s16 + $0xe0] sm:$0xff] }
 0x36a   : > { %v1062_v12 = vpop.f32.mrf.mxu3 }
 0x36b   : > { %v1330_v14 = vsub.f32 %v1266_v10, %v1062_v12  ;;  %v1287_v12 = vld [vmem:[%s2120_s16 + $0xf8] sm:$0xff] }
 0x36c   : > { %v1178_v15 = vpop.f32.mrf.mxu0 }
 0x36d   : > { %1394 = vst [vmem:[%s2284_s8 + $0x50] sm:$0xff] %v1330_v14  ;;  %v1333_v17 = vsub.f32 %v1269_v13, %v1178_v15 }
 0x36e   : > { %v904_v18 = vpop.f32.mrf.mxu2 }
 0x36f   : > { %1397 = vst [vmem:[%s2284_s8 + $0x68] sm:$0xff] %v1333_v17  ;;  %1112 = vmatmul.f32.gmra.mxu3 %v904_v18  ;;  %1225 = vmatmul.f32.gmra.mxu0 %v904_v18  ;;  %v1286_v18 = vld [vmem:[%s2120_s16 + $0xf0] sm:$0xff] }
 0x372   : > { %v1065_v20 = vpop.f32.mrf.mxu3 }
 0x373   : > { %v1332_v19 = vsub.f32 %v1268_v56, %v1065_v20  ;;  %v1289_v20 = vld [vmem:[%s2120_s16 + $0x108] sm:$0xff] }
 0x374   : > { %v1181_v6 = vpop.f32.mrf.mxu0 }
 0x375   : > { %1396 = vst [vmem:[%s2284_s8 + $0x60] sm:$0xff] %v1332_v19  ;;  %v1335_v55 = vsub.f32 %v1271_v21, %v1181_v6 }
 0x376   : > { %v907_v45 = vpop.f32.mrf.mxu2 }
 0x377   : > { %1399 = vst [vmem:[%s2284_s8 + $0x78] sm:$0xff] %v1335_v55  ;;  %1115 = vmatmul.f32.gmra.mxu3 %v907_v45  ;;  %1228 = vmatmul.f32.gmra.mxu0 %v907_v45  ;;  %v1288_v55 = vld [vmem:[%s2120_s16 + $0x100] sm:$0xff] }
 0x37a   : > { %v1068_v27 = vpop.f32.mrf.mxu3 }
 0x37b   : > { %v1334_v63 = vsub.f32 %v1270_v36, %v1068_v27  ;;  %v1291_v36 = vld [vmem:[%s2120_s16 + $0x118] sm:$0xff] }
 0x37c   : > { %v1184_v22 = vpop.f32.mrf.mxu0 }
 0x37d   : > { %1398 = vst [vmem:[%s2284_s8 + $0x70] sm:$0xff] %v1334_v63  ;;  %v1337_v46 = vsub.f32 %v1273_v16, %v1184_v22  ;;  %v1290_v22 = vld [vmem:[%s2120_s16 + $0x110] sm:$0xff] }
 0x37e   : > { %v910_v32 = vpop.f32.mrf.mxu2 }
 0x37f   : > { %1401 = vst [vmem:[%s2284_s8 + $0x88] sm:$0xff] %v1337_v46  ;;  %1118 = vmatmul.f32.gmra.mxu3 %v910_v32  ;;  %1231 = vmatmul.f32.gmra.mxu0 %v910_v32  ;;  %v1293_v32 = vld [vmem:[%s2120_s16 + $0x128] sm:$0xff] }
 0x382   : > { %v1071_v24 = vpop.f32.mrf.mxu3 }
 0x383   : > { %v1336_v26 = vsub.f32 %v1272_v23, %v1071_v24 }
 0x384   : > { %v1187_v58 = vpop.f32.mrf.mxu0 }
 0x385   : > { %1400 = vst [vmem:[%s2284_s8 + $0x80] sm:$0xff] %v1336_v26  ;;  %v1339_v28 = vsub.f32 %v1275_v25, %v1187_v58  ;;  %v1292_v26 = vld [vmem:[%s2120_s16 + $0x120] sm:$0xff] }
 0x386   : > { %v913_v29 = vpop.f32.mrf.mxu2 }
 0x387   : > { %1403 = vst [vmem:[%s2284_s8 + $0x98] sm:$0xff] %v1339_v28  ;;  %1121 = vmatmul.f32.gmra.mxu3 %v913_v29  ;;  %1234 = vmatmul.f32.gmra.mxu0 %v913_v29  ;;  %v1295_v28 = vld [vmem:[%s2120_s16 + $0x138] sm:$0xff] }
 0x38a   : > { %v1074_v30 = vpop.f32.mrf.mxu3 }
 0x38b   : > { %v1338_v33 = vsub.f32 %v1274_v60, %v1074_v30 }
 0x38c   : > { %v1190_v34 = vpop.f32.mrf.mxu0 }
 0x38d   : > { %1402 = vst [vmem:[%s2284_s8 + $0x90] sm:$0xff] %v1338_v33  ;;  %v1341_v35 = vsub.f32 %v1277_v31, %v1190_v34  ;;  %v1294_v31 = vld [vmem:[%s2120_s16 + $0x130] sm:$0xff]  ;;  %v1297_v34 = vld [vmem:[%s2120_s16 + $0x148] sm:$0xff] }
 0x38e   : > { %v916_v37 = vpop.f32.mrf.mxu2 }
 0x38f   : > { %1405 = vst [vmem:[%s2284_s8 + $0xa8] sm:$0xff] %v1341_v35  ;;  %1124 = vmatmul.f32.gmra.mxu3 %v916_v37  ;;  %1237 = vmatmul.f32.gmra.mxu0 %v916_v37 }
 0x392   : > { %v1077_v62 = vpop.f32.mrf.mxu3 }
 0x393   : > { %v1340_v40 = vsub.f32 %v1276_v38, %v1077_v62  ;;  %v1296_v62 = vld [vmem:[%s2120_s16 + $0x140] sm:$0xff] }
 0x394   : > { %v1193_v1 = vpop.f32.mrf.mxu0 }
 0x395   : > { %1404 = vst [vmem:[%s2284_s8 + $0xa0] sm:$0xff] %v1340_v40  ;;  %v1343_v41 = vsub.f32 %v1279_v39, %v1193_v1  ;;  %v1299_v40 = vld [vmem:[%s2120_s16 + $0x158] sm:$0xff] }
 0x396   : > { %v919_v42 = vpop.f32.mrf.mxu2 }
 0x397   : > { %1407 = vst [vmem:[%s2284_s8 + $0xb8] sm:$0xff] %v1343_v41  ;;  %1127 = vmatmul.f32.gmra.mxu3 %v919_v42  ;;  %1240 = vmatmul.f32.gmra.mxu0 %v919_v42 }
 0x39a   : > { %v1080_v44 = vpop.f32.mrf.mxu3 }
 0x39b   : > { %v1342_v48 = vsub.f32 %v1278_v43, %v1080_v44  ;;  %v1298_v43 = vld [vmem:[%s2120_s16 + $0x150] sm:$0xff] }
 0x39c   : > { %v1196_v4 = vpop.f32.mrf.mxu0 }
 0x39d   : > { %1406 = vst [vmem:[%s2284_s8 + $0xb0] sm:$0xff] %v1342_v48  ;;  %v1345_v49 = vsub.f32 %v1281_v47, %v1196_v4  ;;  %v1301_v47 = vld [vmem:[%s2120_s16 + $0x168] sm:$0xff] }
 0x39e   : > { %v922_v50 = vpop.f32.mrf.mxu2 }
 0x39f   : > { %1409 = vst [vmem:[%s2284_s8 + $0xc8] sm:$0xff] %v1345_v49  ;;  %1130 = vmatmul.f32.gmra.mxu3 %v922_v50  ;;  %1243 = vmatmul.f32.gmra.mxu0 %v922_v50  ;;  %v1300_v50 = vld [vmem:[%s2120_s16 + $0x160] sm:$0xff] }
 0x3a2   : > { %v1083_v7 = vpop.f32.mrf.mxu3 }
 0x3a3   : > { %v1344_v53 = vsub.f32 %v1280_v51, %v1083_v7  ;;  %v1303_v7 = vld [vmem:[%s2120_s16 + $0x178] sm:$0xff] }
 0x3a4   : > { %v1199_v54 = vpop.f32.mrf.mxu0 }
 0x3a5   : > { %1408 = vst [vmem:[%s2284_s8 + $0xc0] sm:$0xff] %v1344_v53  ;;  %v1347_v57 = vsub.f32 %v1283_v52, %v1199_v54 }
 0x3a6   : > { %v925_v59 = vpop.f32.mrf.mxu2 }
 0x3a7   : > { %1411 = vst [vmem:[%s2284_s8 + $0xd8] sm:$0xff] %v1347_v57  ;;  %1133 = vmatmul.f32.gmra.mxu3 %v925_v59  ;;  %1246 = vmatmul.f32.gmra.mxu0 %v925_v59  ;;  %v1302_v57 = vld [vmem:[%s2120_s16 + $0x170] sm:$0xff] }
 0x3aa   : > { %v1086_v11 = vpop.f32.mrf.mxu3 }
 0x3ab   : > { %v1346_v2 = vsub.f32 %v1282_v61, %v1086_v11  ;;  %v1305_v61 = vld [vmem:[%s2120_s16 + $0x188] sm:$0xff] }
 0x3ac   : > { %v1202_v3 = vpop.f32.mrf.mxu0 }
 0x3ad   : > { %1410 = vst [vmem:[%s2284_s8 + $0xd0] sm:$0xff] %v1346_v2  ;;  %v1349_v5 = vsub.f32 %v1285_v0, %v1202_v3  ;;  %v1304_v3 = vld [vmem:[%s2120_s16 + $0x180] sm:$0xff] }
 0x3ae   : > { %v928_v8 = vpop.f32.mrf.mxu2 }
 0x3af   : > { %1413 = vst [vmem:[%s2284_s8 + $0xe8] sm:$0xff] %v1349_v5  ;;  %1136 = vmatmul.f32.gmra.mxu3 %v928_v8  ;;  %1249 = vmatmul.f32.gmra.mxu0 %v928_v8  ;;  %v1307_v8 = vld [vmem:[%s2120_s16 + $0x198] sm:$0xff] }
 0x3b2   : > { %v1089_v10 = vpop.f32.mrf.mxu3 }
 0x3b3   : > { %v1348_v13 = vsub.f32 %v1284_v9, %v1089_v10 }
 0x3b4   : > { %v1205_v14 = vpop.f32.mrf.mxu0 }
 0x3b5   : > { %1412 = vst [vmem:[%s2284_s8 + $0xe0] sm:$0xff] %v1348_v13  ;;  %v1351_v15 = vsub.f32 %v1287_v12, %v1205_v14  ;;  %v1306_v13 = vld [vmem:[%s2120_s16 + $0x190] sm:$0xff] }
 0x3b6   : > { %v931_v17 = vpop.f32.mrf.mxu2 }
 0x3b7   : > { %1415 = vst [vmem:[%s2284_s8 + $0xf8] sm:$0xff] %v1351_v15  ;;  %1139 = vmatmul.f32.gmra.mxu3 %v931_v17  ;;  %1252 = vmatmul.f32.gmra.mxu0 %v931_v17  ;;  %v1309_v15 = vld [vmem:[%s2120_s16 + $0x1a8] sm:$0xff] }
 0x3ba   : > { %v1092_v56 = vpop.f32.mrf.mxu3 }
 0x3bb   : > { %v1350_v21 = vsub.f32 %v1286_v18, %v1092_v56 }
 0x3bc   : > { %v1208_v19 = vpop.f32.mrf.mxu0 }
 0x3bd   : > { %1414 = vst [vmem:[%s2284_s8 + $0xf0] sm:$0xff] %v1350_v21  ;;  %v1353_v6 = vsub.f32 %v1289_v20, %v1208_v19  ;;  %v1308_v20 = vld [vmem:[%s2120_s16 + $0x1a0] sm:$0xff]  ;;  %v1311_v19 = vld [vmem:[%s2120_s16 + $0x1b8] sm:$0xff] }
 0x3bf   : > { %1417 = vst [vmem:[%s2284_s8 + $0x108] sm:$0xff] %v1353_v6 }
 0x3c2   : > { %v1095_v45 = vpop.f32.mrf.mxu3 }
 0x3c3   : > { %v1352_v27 = vsub.f32 %v1288_v55, %v1095_v45 }
 0x3c4   : > { %v1211_v16 = vpop.f32.mrf.mxu0 }
 0x3c5   : > { %1416 = vst [vmem:[%s2284_s8 + $0x100] sm:$0xff] %v1352_v27  ;;  %v1355_v63 = vsub.f32 %v1291_v36, %v1211_v16  ;;  %v1310_v36 = vld [vmem:[%s2120_s16 + $0x1b0] sm:$0xff]  ;;  %v1313_v16 = vld [vmem:[%s2120_s16 + $0x1c8] sm:$0xff] }
 0x3c7   : > { %1419 = vst [vmem:[%s2284_s8 + $0x118] sm:$0xff] %v1355_v63 }
 0x3ca   : > { %v1098_v46 = vpop.f32.mrf.mxu3 }
 0x3cb   : > { %v1354_v23 = vsub.f32 %v1290_v22, %v1098_v46 }
 0x3cc   : > { %v1214_v24 = vpop.f32.mrf.mxu0 }
 0x3cd   : > { %1418 = vst [vmem:[%s2284_s8 + $0x110] sm:$0xff] %v1354_v23  ;;  %v1357_v25 = vsub.f32 %v1293_v32, %v1214_v24  ;;  %v1312_v32 = vld [vmem:[%s2120_s16 + $0x1c0] sm:$0xff]  ;;  %v1315_v24 = vld [vmem:[%s2120_s16 + $0x1d8] sm:$0xff] }
 0x3cf   : > { %1421 = vst [vmem:[%s2284_s8 + $0x128] sm:$0xff] %v1357_v25 }
 0x3d2   : > { %v1101_v58 = vpop.f32.mrf.mxu3 }
 0x3d3   : > { %v1356_v29 = vsub.f32 %v1292_v26, %v1101_v58 }
 0x3d4   : > { %v1217_v60 = vpop.f32.mrf.mxu0 }
 0x3d5   : > { %1420 = vst [vmem:[%s2284_s8 + $0x120] sm:$0xff] %v1356_v29  ;;  %v1359_v30 = vsub.f32 %v1295_v28, %v1217_v60  ;;  %v1314_v28 = vld [vmem:[%s2120_s16 + $0x1d0] sm:$0xff]  ;;  %v1317_v60 = vld [vmem:[%s2120_s16 + $0x1e8] sm:$0xff] }
 0x3d7   : > { %1423 = vst [vmem:[%s2284_s8 + $0x138] sm:$0xff] %v1359_v30 }
 0x3da   : > { %v1104_v33 = vpop.f32.mrf.mxu3 }
 0x3db   : > { %v1358_v35 = vsub.f32 %v1294_v31, %v1104_v33 }
 0x3dc   : > { %v1220_v37 = vpop.f32.mrf.mxu0 }
 0x3dd   : > { %1422 = vst [vmem:[%s2284_s8 + $0x130] sm:$0xff] %v1358_v35  ;;  %v1361_v38 = vsub.f32 %v1297_v34, %v1220_v37  ;;  %v1316_v34 = vld [vmem:[%s2120_s16 + $0x1e0] sm:$0xff]  ;;  %v1319_v37 = vld [vmem:[%s2120_s16 + $0x1f8] sm:$0xff] }
 0x3df   : > { %1425 = vst [vmem:[%s2284_s8 + $0x148] sm:$0xff] %v1361_v38 }
 0x3e2   : > { %v1107_v39 = vpop.f32.mrf.mxu3 }
 0x3e3   : > { %v1360_v1 = vsub.f32 %v1296_v62, %v1107_v39 }
 0x3e4   : > { %v1223_v41 = vpop.f32.mrf.mxu0 }
 0x3e5   : > { %1424 = vst [vmem:[%s2284_s8 + $0x140] sm:$0xff] %v1360_v1  ;;  %v1363_v42 = vsub.f32 %v1299_v40, %v1223_v41  ;;  %v1318_v40 = vld [vmem:[%s2120_s16 + $0x1f0] sm:$0xff] }
 0x3e7   : > { %1427 = vst [vmem:[%s2284_s8 + $0x158] sm:$0xff] %v1363_v42 }
 0x3ea   : > { %v1110_v44 = vpop.f32.mrf.mxu3 }
 0x3eb   : > { %v1362_v48 = vsub.f32 %v1298_v43, %v1110_v44 }
 0x3ec   : > { %v1226_v4 = vpop.f32.mrf.mxu0 }
 0x3ed   : > { %1426 = vst [vmem:[%s2284_s8 + $0x150] sm:$0xff] %v1362_v48  ;;  %v1365_v49 = vsub.f32 %v1301_v47, %v1226_v4 }
 0x3ef   : > { %1429 = vst [vmem:[%s2284_s8 + $0x168] sm:$0xff] %v1365_v49 }
 0x3f2   : > { %v1113_v51 = vpop.f32.mrf.mxu3 }
 0x3f3   : > { %v1364_v52 = vsub.f32 %v1300_v50, %v1113_v51 }
 0x3f4   : > { %v1229_v53 = vpop.f32.mrf.mxu0 }
 0x3f5   : > { %1428 = vst [vmem:[%s2284_s8 + $0x160] sm:$0xff] %v1364_v52  ;;  %v1367_v54 = vsub.f32 %v1303_v7, %v1229_v53 }
 0x3f7   : > { %1431 = vst [vmem:[%s2284_s8 + $0x178] sm:$0xff] %v1367_v54 }
 0x3fa   : > { %v1116_v59 = vpop.f32.mrf.mxu3 }
 0x3fb   : > { %v1366_v11 = vsub.f32 %v1302_v57, %v1116_v59 }
 0x3fc   : > { %v1232_v0 = vpop.f32.mrf.mxu0 }
 0x3fd   : > { %1430 = vst [vmem:[%s2284_s8 + $0x170] sm:$0xff] %v1366_v11  ;;  %v1369_v2 = vsub.f32 %v1305_v61, %v1232_v0 }
 0x3ff   : > { %1433 = vst [vmem:[%s2284_s8 + $0x188] sm:$0xff] %v1369_v2 }
 0x402   : > { %v1119_v5 = vpop.f32.mrf.mxu3 }
 0x403   : > { %v1368_v9 = vsub.f32 %v1304_v3, %v1119_v5 }
 0x404   : > { %v1235_v10 = vpop.f32.mrf.mxu0 }
 0x405   : > { %1432 = vst [vmem:[%s2284_s8 + $0x180] sm:$0xff] %v1368_v9  ;;  %v1371_v12 = vsub.f32 %v1307_v8, %v1235_v10 }
 0x407   : > { %1435 = vst [vmem:[%s2284_s8 + $0x198] sm:$0xff] %v1371_v12 }
 0x40a   : > { %v1122_v14 = vpop.f32.mrf.mxu3 }
 0x40b   : > { %v1370_v17 = vsub.f32 %v1306_v13, %v1122_v14 }
 0x40c   : > { %v1238_v18 = vpop.f32.mrf.mxu0 }
 0x40d   : > { %1434 = vst [vmem:[%s2284_s8 + $0x190] sm:$0xff] %v1370_v17  ;;  %v1373_v56 = vsub.f32 %v1309_v15, %v1238_v18 }
 0x40f   : > { %1437 = vst [vmem:[%s2284_s8 + $0x1a8] sm:$0xff] %v1373_v56 }
 0x412   : > { %v1125_v21 = vpop.f32.mrf.mxu3 }
 0x413   : > { %v1372_v6 = vsub.f32 %v1308_v20, %v1125_v21 }
 0x414   : > { %v1241_v55 = vpop.f32.mrf.mxu0 }
 0x415   : > { %1436 = vst [vmem:[%s2284_s8 + $0x1a0] sm:$0xff] %v1372_v6  ;;  %v1375_v45 = vsub.f32 %v1311_v19, %v1241_v55 }
 0x417   : > { %1439 = vst [vmem:[%s2284_s8 + $0x1b8] sm:$0xff] %v1375_v45 }
 0x41a   : > { %v1128_v27 = vpop.f32.mrf.mxu3 }
 0x41b   : > { %v1374_v63 = vsub.f32 %v1310_v36, %v1128_v27 }
 0x41c   : > { %v1244_v22 = vpop.f32.mrf.mxu0 }
 0x41d   : > { %1438 = vst [vmem:[%s2284_s8 + $0x1b0] sm:$0xff] %v1374_v63  ;;  %v1377_v46 = vsub.f32 %v1313_v16, %v1244_v22 }
 0x41f   : > { %1441 = vst [vmem:[%s2284_s8 + $0x1c8] sm:$0xff] %v1377_v46 }
 0x422   : > { %v1131_v23 = vpop.f32.mrf.mxu3 }
 0x423   : > { %v1376_v25 = vsub.f32 %v1312_v32, %v1131_v23 }
 0x424   : > { %v1247_v26 = vpop.f32.mrf.mxu0 }
 0x425   : > { %1440 = vst [vmem:[%s2284_s8 + $0x1c0] sm:$0xff] %v1376_v25  ;;  %v1379_v58 = vsub.f32 %v1315_v24, %v1247_v26 }
 0x427   : > { %1443 = vst [vmem:[%s2284_s8 + $0x1d8] sm:$0xff] %v1379_v58 }
 0x42a   : > { %v1134_v29 = vpop.f32.mrf.mxu3 }
 0x42b   : > { %v1378_v30 = vsub.f32 %v1314_v28, %v1134_v29 }
 0x42c   : > { %v1250_v31 = vpop.f32.mrf.mxu0 }
 0x42d   : > { %1442 = vst [vmem:[%s2284_s8 + $0x1d0] sm:$0xff] %v1378_v30  ;;  %v1381_v33 = vsub.f32 %v1317_v60, %v1250_v31 }
 0x42f   : > { %1445 = vst [vmem:[%s2284_s8 + $0x1e8] sm:$0xff] %v1381_v33 }
 0x432   : > { %v1137_v35 = vpop.f32.mrf.mxu3 }
 0x433   : > { %v1380_v38 = vsub.f32 %v1316_v34, %v1137_v35 }
 0x434   : > { %v1253_v62 = vpop.f32.mrf.mxu0 }
 0x435   : > { %1444 = vst [vmem:[%s2284_s8 + $0x1e0] sm:$0xff] %v1380_v38  ;;  %v1383_v39 = vsub.f32 %v1319_v37, %v1253_v62 }
 0x437   : > { %1447 = vst [vmem:[%s2284_s8 + $0x1f8] sm:$0xff] %v1383_v39 }
 0x43a   : > { %v1140_v1 = vpop.f32.mrf.mxu3 }
 0x43b   : > { %v1382_v41 = vsub.f32 %v1318_v40, %v1140_v1 }
 0x43d   : > { %1446 = vst [vmem:[%s2284_s8 + $0x1f0] sm:$0xff] %v1382_v41 }
 0x43e   : > { %1904 = shalt.err (!%p1901_p11)
}
 0x43f   : > { %s1960_s28 = smov 256   ;;  %s1961_s16 = smov 16  }
 0x440   : > { %1688 = dma.vmem_to_hbm [thread:$0]  (%p2076_p0), %s1470_s15, 8192, %s1472_s7, %s1454_s22, %s1960_s28, %s1960_s28, %s1961_s16  }
 0x441 PF: > { %p1715_p12 = scmp.ge.s32.totalorder %s1951_s21, 2  ;;  %s1494_s8 = sand.u32 1, %s1939_s18  }
 0x442   : > { %s1495_s11 = scalar_lea.sflag [#allocation6], %s1494_s8 }
 0x443   : > { %p1705_p13 = pnand %p1715_p12, %p2027_p6 }
 0x445   : > { %p1706_p3 = pneg %p1705_p13 }
 0x447   : > { %1934 = dma.done.wait (%p1706_p3), %s1495_s11, 8192  }
 0x448   : > { %1936 = vsyncadd (%p1706_p3), %s1495_s11, 4294959104  ;;  %p21_p5 = scmp.ge.s32.totalorder %s2063_s30, 8   ;;  %s2460_s18 = smov %s1943_s19 }
 0x449   : > { %s2461_s19 = smov %s1947_s20  ;;  %s2462_s20 = smov %s2072_s9 }
 0x44a   : > { %s2463_s21 = smov %s2063_s30  ;;  %23 = sbr.rel (!%p21_p5) target bundleno = 7 (0x7), region = 137 }
 0x44f   :  { %1501 = vsyncpa [#allocation5], 1 }
 0x450   :  { %1503 = vsyncpa [#allocation5 + $0x1], 1 }
 0x451   :  { %1504 = vsyncpa [#allocation8], 1 }
 0x452   :  { %1505 = vsyncpa [#allocation11], 1 }
 0x453   :  { %1507 = vsyncpa [#allocation11 + $0x1], 1 }
 0x454   :  { %1508 = vsyncpa [#allocation6], 1 }
 0x455   :  { %1510 = vsyncpa [#allocation6 + $0x1], 1 }

</bundles_post_ra>
